<compile_context>
chip_gen: v7x
topology: tpu7x:2x2x1
jax: 0.10.0
libtpu: 0.0.40
codegen_flags: <defaults>
</compile_context>

<pallas_src>
import functools

import jax
import jax.numpy as jnp
from jax.experimental import pallas as pl
from jax.experimental.pallas import tpu as pltpu


# ---------------------------------------------------------------------------
# Fused Pallas kernel: LSTM (batch_first, gate order [i,f,g,o], zero init)
# followed by Linear -> Tanh -> Linear -> Tanh -> Linear.
# ---------------------------------------------------------------------------
def fused_lstm_fc_kernel(S, B, inp_ref, users_ref, wih_ref, whh_ref, b_ref,
                         w1h_ref, w1u_ref, b1_ref, w2_ref, b2_ref,
                         w3_ref, b3_ref, out_ref, xproj_scr):
    """
    inp_ref  : (S*B, D)  time-major flattened input, f32
    users_ref: (B, U)    user-embedding rows, f32
    wih_ref  : (D, 4H) bf16   whh_ref: (H, 4H) bf16   b_ref: (1, 4H) f32
    w1h_ref  : (H, F)  bf16   w1u_ref: (U, F)  bf16   (fc1 split over the concat)
    w2_ref   : (F, F)  bf16   w3_ref : (F, Apad) bf16
    b1/b2/b3 : (1, ·)  f32
    out_ref  : (B, Apad) f32  (lane-dense, Apad multiple of 128)
    xproj_scr: (S*B, 4H) f32 scratch — hoisted x @ W_ih + b for all timesteps
    """
    H = whh_ref.shape[0]

    # ---- hoisted input projection: one batched MXU matmul (M = S*B) ----
    x_bf = inp_ref[...].astype(jnp.bfloat16)
    xproj_scr[...] = (
        jnp.dot(x_bf, wih_ref[...], preferred_element_type=jnp.float32)
        + b_ref[...])                                             # (S*B, 4H)

    # ---- recurrence: h, c live in vregs; loop fully unrolled (S static) ----
    h = jnp.zeros((B, H), dtype=jnp.float32)
    c = jnp.zeros((B, H), dtype=jnp.float32)
    for t in range(S):
        gates = (xproj_scr[t * B:(t + 1) * B, :]
                 + jnp.dot(h.astype(jnp.bfloat16), whh_ref[...],
                           preferred_element_type=jnp.float32))   # (B, 4H)
        i_g = jax.nn.sigmoid(gates[:, 0 * H:1 * H])
        f_g = jax.nn.sigmoid(gates[:, 1 * H:2 * H])
        g_g = jnp.tanh(gates[:, 2 * H:3 * H])
        o_g = jax.nn.sigmoid(gates[:, 3 * H:4 * H])
        c = f_g * c + i_g * g_g
        h = o_g * jnp.tanh(c)

    # ---- FC head epilogue: concat(h, users) @ W1 == h @ W1_h + users @ W1_u ----
    u_bf = users_ref[...].astype(jnp.bfloat16)
    h1 = jnp.tanh(
        jnp.dot(h.astype(jnp.bfloat16), w1h_ref[...],
                preferred_element_type=jnp.float32)
        + jnp.dot(u_bf, w1u_ref[...], preferred_element_type=jnp.float32)
        + b1_ref[...])
    h2 = jnp.tanh(
        jnp.dot(h1.astype(jnp.bfloat16), w2_ref[...],
                preferred_element_type=jnp.float32)
        + b2_ref[...])
    out_ref[...] = (
        jnp.dot(h2.astype(jnp.bfloat16), w3_ref[...],
                preferred_element_type=jnp.float32)
        + b3_ref[...]).astype(out_ref.dtype)


def run_fused_lstm_fc(inp_flat, users_pad, p, S, Bp):
    four_h = p["wih"].shape[1]
    a_pad = p["w3"].shape[1]
    vmem = pl.BlockSpec(memory_space=pltpu.MemorySpace.VMEM)
    return pl.pallas_call(
        functools.partial(fused_lstm_fc_kernel, S, Bp),
        out_shape=jax.ShapeDtypeStruct((Bp, a_pad), jnp.float32),
        in_specs=[vmem] * 12,
        out_specs=vmem,
        scratch_shapes=[pltpu.VMEM((S * Bp, four_h), jnp.float32)],
    )(inp_flat, users_pad, p["wih"], p["whh"], p["b_lstm"],
      p["w1h"], p["w1u"], p["b1"], p["w2"], p["b2"], p["w3"], p["b3"])


# ---------------------------------------------------------------------------
# One-time parameter prep (transpose / bias-fold / fc1-split / bf16 / padding)
# ---------------------------------------------------------------------------
def prepare_params(raw):
    H = raw["w_hh"].shape[1]                     # hidden size == lstm_input_dim
    A = raw["fc3_w"].shape[0]                    # app_number
    a_pad = ((A + 127) // 128) * 128             # lane-dense fc3 output
    fc1_t = raw["fc1_w"].T                       # (F, F), rows = input features
    w3 = jnp.pad(raw["fc3_w"].T, ((0, 0), (0, a_pad - A)))
    b3 = jnp.pad(raw["fc3_b"], (0, a_pad - A))
    return dict(
        app_number=A,
        app_embedding=raw["app_embedding"],
        user_embedding=raw["user_embedding"],
        weights=raw["weights"],
        phases=raw["phases"],
        wih=raw["w_ih"].T.astype(jnp.bfloat16),                  # (D, 4H)
        whh=raw["w_hh"].T.astype(jnp.bfloat16),                  # (H, 4H)
        b_lstm=(raw["b_ih"] + raw["b_hh"])[None, :].astype(jnp.float32),
        w1h=fc1_t[:H, :].astype(jnp.bfloat16),                   # (H, F)
        w1u=fc1_t[H:, :].astype(jnp.bfloat16),                   # (U, F)
        b1=raw["fc1_b"][None, :].astype(jnp.float32),
        w2=raw["fc2_w"].T.astype(jnp.bfloat16),                  # (F, F)
        b2=raw["fc2_b"][None, :].astype(jnp.float32),
        w3=w3.astype(jnp.bfloat16),                              # (F, Apad)
        b3=b3[None, :].astype(jnp.float32),
    )


# ---------------------------------------------------------------------------
# Forward pass (matches ModelLSTM.forward, use_poi=False)
# ---------------------------------------------------------------------------
def model_lstm_forward(x, p):
    """x: (B, S, 4) int32 — columns: [user_id, time, unused, app_id]."""
    apps_idx = x[:, :, 3]
    times = x[:, :, 1].astype(jnp.float32)[..., None]            # (B, S, 1)
    users_idx = x[:, 0, 0]

    # TODO(synk): embedding gather + time2vec prep stay in XLA glue
    # (data-dependent gather); could be folded in via PrefetchScalarGridSpec.
    t2v = p["weights"] * times + p["phases"]                     # (B, S, T)
    times_feat = jnp.concatenate(
        [t2v[:, :, :1], jnp.sin(t2v[:, :, 1:])], axis=-1)
    apps_e = jnp.take(p["app_embedding"], apps_idx, axis=0)      # (B, S, Ae)
    users_e = jnp.take(p["user_embedding"], users_idx, axis=0)   # (B, U)

    inp = jnp.concatenate([apps_e, times_feat], axis=-1)         # (B, S, D)
    B, S, D = inp.shape
    Bp = max(8, -(-B // 8) * 8)                                  # sublane pad

    inp_tm = jnp.transpose(inp, (1, 0, 2)).astype(jnp.float32)   # (S, B, D)
    inp_tm = jnp.pad(inp_tm, ((0, 0), (0, Bp - B), (0, 0)))
    inp_flat = inp_tm.reshape(S * Bp, D)
    users_pad = jnp.pad(users_e.astype(jnp.float32), ((0, Bp - B), (0, 0)))

    out_pad = run_fused_lstm_fc(inp_flat, users_pad, p, S, Bp)   # (Bp, Apad)
    return out_pad[:B, :p["app_number"]]


# ---------------------------------------------------------------------------
# Deterministic parameter init (shapes from ModelLSTM.__init__, use_poi=False)
# ---------------------------------------------------------------------------
def make_params(key, app_number, user_number, app_dim, user_dim, time_dim):
    lstm_d = app_dim + time_dim
    fc_d = lstm_d + user_dim
    keys = jax.random.split(key, 16)
    n = lambda k, s: (jax.random.normal(k, s, dtype=jnp.float32) * 0.1)
    return dict(
        app_embedding=n(keys[0], (app_number, app_dim)),
        user_embedding=n(keys[1], (user_number, user_dim)),
        weights=n(keys[2], (time_dim,)),
        phases=n(keys[3], (time_dim,)),
        w_ih=n(keys[4], (4 * lstm_d, lstm_d)),
        w_hh=n(keys[5], (4 * lstm_d, lstm_d)),
        b_ih=n(keys[6], (4 * lstm_d,)),
        b_hh=n(keys[7], (4 * lstm_d,)),
        fc1_w=n(keys[8], (fc_d, fc_d)),
        fc1_b=n(keys[9], (fc_d,)),
        fc2_w=n(keys[10], (fc_d, fc_d)),
        fc2_b=n(keys[11], (fc_d,)),
        fc3_w=n(keys[12], (app_number, fc_d)),
        fc3_b=n(keys[13], (app_number,)),
    )


if __name__ == "__main__":
    APP_NUMBER = 64
    USER_NUMBER = 16
    APP_DIM = 96
    USER_DIM = 32
    TIME_DIM = 32          # -> lstm_input_dim = 128, fc_dim = 160
    SEQ = 8
    BATCH = 2

    key = jax.random.PRNGKey(0)
    k_p, k_u, k_t, k_misc, k_a = jax.random.split(key, 5)

    raw = make_params(k_p, APP_NUMBER, USER_NUMBER, APP_DIM, USER_DIM, TIME_DIM)
    params = prepare_params(raw)   # one-time: transposes / bias fold / bf16 / pad

    users = jax.random.randint(k_u, (BATCH, SEQ), 0, USER_NUMBER)
    times = jax.random.randint(k_t, (BATCH, SEQ), 0, 24)
    misc = jax.random.randint(k_misc, (BATCH, SEQ), 0, 10)
    apps = jax.random.randint(k_a, (BATCH, SEQ), 0, APP_NUMBER)
    x = jnp.stack([users, times, misc, apps], axis=-1).astype(jnp.int32)  # (B,S,4)

    out = model_lstm_forward(x, params)
    out = jax.block_until_ready(out)
    assert out.shape == (BATCH, APP_NUMBER), out.shape
    assert bool(jnp.all(jnp.isfinite(out)))
    print("KERNEL_OK")
</pallas_src>

<mosaic_0001>
module attributes {stable_mosaic.version = 11 : i64} {
  func.func @fused_lstm_fc_kernel(%arg0: memref<64x128xf32, #tpu.memory_space<vmem>>, %arg1: memref<8x32xf32, #tpu.memory_space<vmem>>, %arg2: memref<128x512xbf16, #tpu.memory_space<vmem>>, %arg3: memref<128x512xbf16, #tpu.memory_space<vmem>>, %arg4: memref<1x512xf32, #tpu.memory_space<vmem>>, %arg5: memref<128x160xbf16, #tpu.memory_space<vmem>>, %arg6: memref<32x160xbf16, #tpu.memory_space<vmem>>, %arg7: memref<1x160xf32, #tpu.memory_space<vmem>>, %arg8: memref<160x160xbf16, #tpu.memory_space<vmem>>, %arg9: memref<1x160xf32, #tpu.memory_space<vmem>>, %arg10: memref<160x128xbf16, #tpu.memory_space<vmem>>, %arg11: memref<1x128xf32, #tpu.memory_space<vmem>>, %arg12: memref<8x128xf32, #tpu.memory_space<vmem>>, %arg13: memref<64x512xf32, #tpu.memory_space<vmem>>) attributes {dimension_semantics = [], scalar_prefetch = 0 : i64, scratch_operands = 1 : i64, tpu.core_type = #tpu.core_type<tc>} {
    %c0 = arith.constant 0 : index
    %c0_0 = arith.constant 0 : index
    %0 = vector.load %arg0[%c0, %c0_0] : memref<64x128xf32, #tpu.memory_space<vmem>>, vector<64x128xf32>
    %1 = arith.truncf %0 : vector<64x128xf32> to vector<64x128xbf16>
    %c0_1 = arith.constant 0 : index
    %c0_2 = arith.constant 0 : index
    %2 = vector.load %arg2[%c0_1, %c0_2] : memref<128x512xbf16, #tpu.memory_space<vmem>>, vector<128x512xbf16>
    %cst = arith.constant dense<0.000000e+00> : vector<64x512xf32>
    %3 = tpu.matmul %1, %2, %cst {dimension_numbers = #tpu.dot_dimension_numbers<[1], [0], [0], [1], [0, 0, 1, 1], [], []>} : vector<64x128xbf16>, vector<128x512xbf16>, vector<64x512xf32> -> vector<64x512xf32>
    %c0_3 = arith.constant 0 : index
    %c0_4 = arith.constant 0 : index
    %4 = vector.load %arg4[%c0_3, %c0_4] : memref<1x512xf32, #tpu.memory_space<vmem>>, vector<1x512xf32>
    %5 = vector.broadcast %4 : vector<1x512xf32> to vector<64x512xf32>
    %6 = arith.addf %3, %5 : vector<64x512xf32>
    %c0_5 = arith.constant 0 : index
    %c0_6 = arith.constant 0 : index
    %7 = vector.load %arg13[%c0_5, %c0_6] : memref<64x512xf32, #tpu.memory_space<vmem>>, vector<64x512xf32>
    tpu.vector_store %arg13[%c0_5, %c0_6], %6 {strides = array<i32>} : memref<64x512xf32, #tpu.memory_space<vmem>>, vector<64x512xf32>,
    %cst_7 = arith.constant 0.000000e+00 : f32
    %8 = vector.broadcast %cst_7 : f32 to vector<8x128xf32>
    %cst_8 = arith.constant 0.000000e+00 : f32
    %9 = vector.broadcast %cst_8 : f32 to vector<8x128xf32>
    %c0_9 = arith.constant 0 : index
    %c0_10 = arith.constant 0 : index
    %10 = vector.load %arg13[%c0_9, %c0_10] : memref<64x512xf32, #tpu.memory_space<vmem>>, vector<8x512xf32>
    %11 = arith.truncf %8 : vector<8x128xf32> to vector<8x128xbf16>
    %c0_11 = arith.constant 0 : index
    %c0_12 = arith.constant 0 : index
    %12 = vector.load %arg3[%c0_11, %c0_12] : memref<128x512xbf16, #tpu.memory_space<vmem>>, vector<128x512xbf16>
    %cst_13 = arith.constant dense<0.000000e+00> : vector<8x512xf32>
    %13 = tpu.matmul %11, %12, %cst_13 {dimension_numbers = #tpu.dot_dimension_numbers<[1], [0], [0], [1], [0, 0, 1, 1], [], []>} : vector<8x128xbf16>, vector<128x512xbf16>, vector<8x512xf32> -> vector<8x512xf32>
    %14 = arith.addf %10, %13 : vector<8x512xf32>
    %15 = vector.extract_strided_slice %14 {offsets = [0, 0], sizes = [8, 128], strides = [1, 1]} : vector<8x512xf32> to vector<8x128xf32>
    %16 = arith.negf %15 : vector<8x128xf32>
    %17 = math.exp %16 : vector<8x128xf32>
    %cst_14 = arith.constant 1.000000e+00 : f32
    %18 = vector.broadcast %cst_14 : f32 to vector<8x128xf32>
    %19 = arith.addf %18, %17 : vector<8x128xf32>
    %20 = arith.divf %18, %19 : vector<8x128xf32>
    %21 = vector.extract_strided_slice %14 {offsets = [0, 128], sizes = [8, 128], strides = [1, 1]} : vector<8x512xf32> to vector<8x128xf32>
    %22 = arith.negf %21 : vector<8x128xf32>
    %23 = math.exp %22 : vector<8x128xf32>
    %cst_15 = arith.constant 1.000000e+00 : f32
    %24 = vector.broadcast %cst_15 : f32 to vector<8x128xf32>
    %25 = arith.addf %24, %23 : vector<8x128xf32>
    %26 = arith.divf %24, %25 : vector<8x128xf32>
    %27 = vector.extract_strided_slice %14 {offsets = [0, 256], sizes = [8, 128], strides = [1, 1]} : vector<8x512xf32> to vector<8x128xf32>
    %28 = math.tanh %27 : vector<8x128xf32>
    %29 = vector.extract_strided_slice %14 {offsets = [0, 384], sizes = [8, 128], strides = [1, 1]} : vector<8x512xf32> to vector<8x128xf32>
    %30 = arith.negf %29 : vector<8x128xf32>
    %31 = math.exp %30 : vector<8x128xf32>
    %cst_16 = arith.constant 1.000000e+00 : f32
    %32 = vector.broadcast %cst_16 : f32 to vector<8x128xf32>
    %33 = arith.addf %32, %31 : vector<8x128xf32>
    %34 = arith.divf %32, %33 : vector<8x128xf32>
    %35 = arith.mulf %26, %9 : vector<8x128xf32>
    %36 = arith.mulf %20, %28 : vector<8x128xf32>
    %37 = arith.addf %35, %36 : vector<8x128xf32>
    %38 = math.tanh %37 : vector<8x128xf32>
    %39 = arith.mulf %34, %38 : vector<8x128xf32>
    %c8 = arith.constant 8 : index
    %c0_17 = arith.constant 0 : index
    %40 = vector.load %arg13[%c8, %c0_17] : memref<64x512xf32, #tpu.memory_space<vmem>>, vector<8x512xf32>
    %41 = arith.truncf %39 : vector<8x128xf32> to vector<8x128xbf16>
    %c0_18 = arith.constant 0 : index
    %c0_19 = arith.constant 0 : index
    %42 = vector.load %arg3[%c0_18, %c0_19] : memref<128x512xbf16, #tpu.memory_space<vmem>>, vector<128x512xbf16>
    %cst_20 = arith.constant dense<0.000000e+00> : vector<8x512xf32>
    %43 = tpu.matmul %41, %42, %cst_20 {dimension_numbers = #tpu.dot_dimension_numbers<[1], [0], [0], [1], [0, 0, 1, 1], [], []>} : vector<8x128xbf16>, vector<128x512xbf16>, vector<8x512xf32> -> vector<8x512xf32>
    %44 = arith.addf %40, %43 : vector<8x512xf32>
    %45 = vector.extract_strided_slice %44 {offsets = [0, 0], sizes = [8, 128], strides = [1, 1]} : vector<8x512xf32> to vector<8x128xf32>
    %46 = arith.negf %45 : vector<8x128xf32>
    %47 = math.exp %46 : vector<8x128xf32>
    %cst_21 = arith.constant 1.000000e+00 : f32
    %48 = vector.broadcast %cst_21 : f32 to vector<8x128xf32>
    %49 = arith.addf %48, %47 : vector<8x128xf32>
    %50 = arith.divf %48, %49 : vector<8x128xf32>
    %51 = vector.extract_strided_slice %44 {offsets = [0, 128], sizes = [8, 128], strides = [1, 1]} : vector<8x512xf32> to vector<8x128xf32>
    %52 = arith.negf %51 : vector<8x128xf32>
    %53 = math.exp %52 : vector<8x128xf32>
    %cst_22 = arith.constant 1.000000e+00 : f32
    %54 = vector.broadcast %cst_22 : f32 to vector<8x128xf32>
    %55 = arith.addf %54, %53 : vector<8x128xf32>
    %56 = arith.divf %54, %55 : vector<8x128xf32>
    %57 = vector.extract_strided_slice %44 {offsets = [0, 256], sizes = [8, 128], strides = [1, 1]} : vector<8x512xf32> to vector<8x128xf32>
    %58 = math.tanh %57 : vector<8x128xf32>
    %59 = vector.extract_strided_slice %44 {offsets = [0, 384], sizes = [8, 128], strides = [1, 1]} : vector<8x512xf32> to vector<8x128xf32>
    %60 = arith.negf %59 : vector<8x128xf32>
    %61 = math.exp %60 : vector<8x128xf32>
    %cst_23 = arith.constant 1.000000e+00 : f32
    %62 = vector.broadcast %cst_23 : f32 to vector<8x128xf32>
    %63 = arith.addf %62, %61 : vector<8x128xf32>
    %64 = arith.divf %62, %63 : vector<8x128xf32>
    %65 = arith.mulf %56, %37 : vector<8x128xf32>
    %66 = arith.mulf %50, %58 : vector<8x128xf32>
    %67 = arith.addf %65, %66 : vector<8x128xf32>
    %68 = math.tanh %67 : vector<8x128xf32>
    %69 = arith.mulf %64, %68 : vector<8x128xf32>
    %c16 = arith.constant 16 : index
    %c0_24 = arith.constant 0 : index
    %70 = vector.load %arg13[%c16, %c0_24] : memref<64x512xf32, #tpu.memory_space<vmem>>, vector<8x512xf32>
    %71 = arith.truncf %69 : vector<8x128xf32> to vector<8x128xbf16>
    %c0_25 = arith.constant 0 : index
    %c0_26 = arith.constant 0 : index
    %72 = vector.load %arg3[%c0_25, %c0_26] : memref<128x512xbf16, #tpu.memory_space<vmem>>, vector<128x512xbf16>
    %cst_27 = arith.constant dense<0.000000e+00> : vector<8x512xf32>
    %73 = tpu.matmul %71, %72, %cst_27 {dimension_numbers = #tpu.dot_dimension_numbers<[1], [0], [0], [1], [0, 0, 1, 1], [], []>} : vector<8x128xbf16>, vector<128x512xbf16>, vector<8x512xf32> -> vector<8x512xf32>
    %74 = arith.addf %70, %73 : vector<8x512xf32>
    %75 = vector.extract_strided_slice %74 {offsets = [0, 0], sizes = [8, 128], strides = [1, 1]} : vector<8x512xf32> to vector<8x128xf32>
    %76 = arith.negf %75 : vector<8x128xf32>
    %77 = math.exp %76 : vector<8x128xf32>
    %cst_28 = arith.constant 1.000000e+00 : f32
    %78 = vector.broadcast %cst_28 : f32 to vector<8x128xf32>
    %79 = arith.addf %78, %77 : vector<8x128xf32>
    %80 = arith.divf %78, %79 : vector<8x128xf32>
    %81 = vector.extract_strided_slice %74 {offsets = [0, 128], sizes = [8, 128], strides = [1, 1]} : vector<8x512xf32> to vector<8x128xf32>
    %82 = arith.negf %81 : vector<8x128xf32>
    %83 = math.exp %82 : vector<8x128xf32>
    %cst_29 = arith.constant 1.000000e+00 : f32
    %84 = vector.broadcast %cst_29 : f32 to vector<8x128xf32>
    %85 = arith.addf %84, %83 : vector<8x128xf32>
    %86 = arith.divf %84, %85 : vector<8x128xf32>
    %87 = vector.extract_strided_slice %74 {offsets = [0, 256], sizes = [8, 128], strides = [1, 1]} : vector<8x512xf32> to vector<8x128xf32>
    %88 = math.tanh %87 : vector<8x128xf32>
    %89 = vector.extract_strided_slice %74 {offsets = [0, 384], sizes = [8, 128], strides = [1, 1]} : vector<8x512xf32> to vector<8x128xf32>
    %90 = arith.negf %89 : vector<8x128xf32>
    %91 = math.exp %90 : vector<8x128xf32>
    %cst_30 = arith.constant 1.000000e+00 : f32
    %92 = vector.broadcast %cst_30 : f32 to vector<8x128xf32>
    %93 = arith.addf %92, %91 : vector<8x128xf32>
    %94 = arith.divf %92, %93 : vector<8x128xf32>
    %95 = arith.mulf %86, %67 : vector<8x128xf32>
    %96 = arith.mulf %80, %88 : vector<8x128xf32>
    %97 = arith.addf %95, %96 : vector<8x128xf32>
    %98 = math.tanh %97 : vector<8x128xf32>
    %99 = arith.mulf %94, %98 : vector<8x128xf32>
    %c24 = arith.constant 24 : index
    %c0_31 = arith.constant 0 : index
    %100 = vector.load %arg13[%c24, %c0_31] : memref<64x512xf32, #tpu.memory_space<vmem>>, vector<8x512xf32>
    %101 = arith.truncf %99 : vector<8x128xf32> to vector<8x128xbf16>
    %c0_32 = arith.constant 0 : index
    %c0_33 = arith.constant 0 : index
    %102 = vector.load %arg3[%c0_32, %c0_33] : memref<128x512xbf16, #tpu.memory_space<vmem>>, vector<128x512xbf16>
    %cst_34 = arith.constant dense<0.000000e+00> : vector<8x512xf32>
    %103 = tpu.matmul %101, %102, %cst_34 {dimension_numbers = #tpu.dot_dimension_numbers<[1], [0], [0], [1], [0, 0, 1, 1], [], []>} : vector<8x128xbf16>, vector<128x512xbf16>, vector<8x512xf32> -> vector<8x512xf32>
    %104 = arith.addf %100, %103 : vector<8x512xf32>
    %105 = vector.extract_strided_slice %104 {offsets = [0, 0], sizes = [8, 128], strides = [1, 1]} : vector<8x512xf32> to vector<8x128xf32>
    %106 = arith.negf %105 : vector<8x128xf32>
    %107 = math.exp %106 : vector<8x128xf32>
    %cst_35 = arith.constant 1.000000e+00 : f32
    %108 = vector.broadcast %cst_35 : f32 to vector<8x128xf32>
    %109 = arith.addf %108, %107 : vector<8x128xf32>
    %110 = arith.divf %108, %109 : vector<8x128xf32>
    %111 = vector.extract_strided_slice %104 {offsets = [0, 128], sizes = [8, 128], strides = [1, 1]} : vector<8x512xf32> to vector<8x128xf32>
    %112 = arith.negf %111 : vector<8x128xf32>
    %113 = math.exp %112 : vector<8x128xf32>
    %cst_36 = arith.constant 1.000000e+00 : f32
    %114 = vector.broadcast %cst_36 : f32 to vector<8x128xf32>
    %115 = arith.addf %114, %113 : vector<8x128xf32>
    %116 = arith.divf %114, %115 : vector<8x128xf32>
    %117 = vector.extract_strided_slice %104 {offsets = [0, 256], sizes = [8, 128], strides = [1, 1]} : vector<8x512xf32> to vector<8x128xf32>
    %118 = math.tanh %117 : vector<8x128xf32>
    %119 = vector.extract_strided_slice %104 {offsets = [0, 384], sizes = [8, 128], strides = [1, 1]} : vector<8x512xf32> to vector<8x128xf32>
    %120 = arith.negf %119 : vector<8x128xf32>
    %121 = math.exp %120 : vector<8x128xf32>
    %cst_37 = arith.constant 1.000000e+00 : f32
    %122 = vector.broadcast %cst_37 : f32 to vector<8x128xf32>
    %123 = arith.addf %122, %121 : vector<8x128xf32>
    %124 = arith.divf %122, %123 : vector<8x128xf32>
    %125 = arith.mulf %116, %97 : vector<8x128xf32>
    %126 = arith.mulf %110, %118 : vector<8x128xf32>
    %127 = arith.addf %125, %126 : vector<8x128xf32>
    %128 = math.tanh %127 : vector<8x128xf32>
    %129 = arith.mulf %124, %128 : vector<8x128xf32>
    %c32 = arith.constant 32 : index
    %c0_38 = arith.constant 0 : index
    %130 = vector.load %arg13[%c32, %c0_38] : memref<64x512xf32, #tpu.memory_space<vmem>>, vector<8x512xf32>
    %131 = arith.truncf %129 : vector<8x128xf32> to vector<8x128xbf16>
    %c0_39 = arith.constant 0 : index
    %c0_40 = arith.constant 0 : index
    %132 = vector.load %arg3[%c0_39, %c0_40] : memref<128x512xbf16, #tpu.memory_space<vmem>>, vector<128x512xbf16>
    %cst_41 = arith.constant dense<0.000000e+00> : vector<8x512xf32>
    %133 = tpu.matmul %131, %132, %cst_41 {dimension_numbers = #tpu.dot_dimension_numbers<[1], [0], [0], [1], [0, 0, 1, 1], [], []>} : vector<8x128xbf16>, vector<128x512xbf16>, vector<8x512xf32> -> vector<8x512xf32>
    %134 = arith.addf %130, %133 : vector<8x512xf32>
    %135 = vector.extract_strided_slice %134 {offsets = [0, 0], sizes = [8, 128], strides = [1, 1]} : vector<8x512xf32> to vector<8x128xf32>
    %136 = arith.negf %135 : vector<8x128xf32>
    %137 = math.exp %136 : vector<8x128xf32>
    %cst_42 = arith.constant 1.000000e+00 : f32
    %138 = vector.broadcast %cst_42 : f32 to vector<8x128xf32>
    %139 = arith.addf %138, %137 : vector<8x128xf32>
    %140 = arith.divf %138, %139 : vector<8x128xf32>
    %141 = vector.extract_strided_slice %134 {offsets = [0, 128], sizes = [8, 128], strides = [1, 1]} : vector<8x512xf32> to vector<8x128xf32>
    %142 = arith.negf %141 : vector<8x128xf32>
    %143 = math.exp %142 : vector<8x128xf32>
    %cst_43 = arith.constant 1.000000e+00 : f32
    %144 = vector.broadcast %cst_43 : f32 to vector<8x128xf32>
    %145 = arith.addf %144, %143 : vector<8x128xf32>
    %146 = arith.divf %144, %145 : vector<8x128xf32>
    %147 = vector.extract_strided_slice %134 {offsets = [0, 256], sizes = [8, 128], strides = [1, 1]} : vector<8x512xf32> to vector<8x128xf32>
    %148 = math.tanh %147 : vector<8x128xf32>
    %149 = vector.extract_strided_slice %134 {offsets = [0, 384], sizes = [8, 128], strides = [1, 1]} : vector<8x512xf32> to vector<8x128xf32>
    %150 = arith.negf %149 : vector<8x128xf32>
    %151 = math.exp %150 : vector<8x128xf32>
    %cst_44 = arith.constant 1.000000e+00 : f32
    %152 = vector.broadcast %cst_44 : f32 to vector<8x128xf32>
    %153 = arith.addf %152, %151 : vector<8x128xf32>
    %154 = arith.divf %152, %153 : vector<8x128xf32>
    %155 = arith.mulf %146, %127 : vector<8x128xf32>
    %156 = arith.mulf %140, %148 : vector<8x128xf32>
    %157 = arith.addf %155, %156 : vector<8x128xf32>
    %158 = math.tanh %157 : vector<8x128xf32>
    %159 = arith.mulf %154, %158 : vector<8x128xf32>
    %c40 = arith.constant 40 : index
    %c0_45 = arith.constant 0 : index
    %160 = vector.load %arg13[%c40, %c0_45] : memref<64x512xf32, #tpu.memory_space<vmem>>, vector<8x512xf32>
    %161 = arith.truncf %159 : vector<8x128xf32> to vector<8x128xbf16>
    %c0_46 = arith.constant 0 : index
    %c0_47 = arith.constant 0 : index
    %162 = vector.load %arg3[%c0_46, %c0_47] : memref<128x512xbf16, #tpu.memory_space<vmem>>, vector<128x512xbf16>
    %cst_48 = arith.constant dense<0.000000e+00> : vector<8x512xf32>
    %163 = tpu.matmul %161, %162, %cst_48 {dimension_numbers = #tpu.dot_dimension_numbers<[1], [0], [0], [1], [0, 0, 1, 1], [], []>} : vector<8x128xbf16>, vector<128x512xbf16>, vector<8x512xf32> -> vector<8x512xf32>
    %164 = arith.addf %160, %163 : vector<8x512xf32>
    %165 = vector.extract_strided_slice %164 {offsets = [0, 0], sizes = [8, 128], strides = [1, 1]} : vector<8x512xf32> to vector<8x128xf32>
    %166 = arith.negf %165 : vector<8x128xf32>
    %167 = math.exp %166 : vector<8x128xf32>
    %cst_49 = arith.constant 1.000000e+00 : f32
    %168 = vector.broadcast %cst_49 : f32 to vector<8x128xf32>
    %169 = arith.addf %168, %167 : vector<8x128xf32>
    %170 = arith.divf %168, %169 : vector<8x128xf32>
    %171 = vector.extract_strided_slice %164 {offsets = [0, 128], sizes = [8, 128], strides = [1, 1]} : vector<8x512xf32> to vector<8x128xf32>
    %172 = arith.negf %171 : vector<8x128xf32>
    %173 = math.exp %172 : vector<8x128xf32>
    %cst_50 = arith.constant 1.000000e+00 : f32
    %174 = vector.broadcast %cst_50 : f32 to vector<8x128xf32>
    %175 = arith.addf %174, %173 : vector<8x128xf32>
    %176 = arith.divf %174, %175 : vector<8x128xf32>
    %177 = vector.extract_strided_slice %164 {offsets = [0, 256], sizes = [8, 128], strides = [1, 1]} : vector<8x512xf32> to vector<8x128xf32>
    %178 = math.tanh %177 : vector<8x128xf32>
    %179 = vector.extract_strided_slice %164 {offsets = [0, 384], sizes = [8, 128], strides = [1, 1]} : vector<8x512xf32> to vector<8x128xf32>
    %180 = arith.negf %179 : vector<8x128xf32>
    %181 = math.exp %180 : vector<8x128xf32>
    %cst_51 = arith.constant 1.000000e+00 : f32
    %182 = vector.broadcast %cst_51 : f32 to vector<8x128xf32>
    %183 = arith.addf %182, %181 : vector<8x128xf32>
    %184 = arith.divf %182, %183 : vector<8x128xf32>
    %185 = arith.mulf %176, %157 : vector<8x128xf32>
    %186 = arith.mulf %170, %178 : vector<8x128xf32>
    %187 = arith.addf %185, %186 : vector<8x128xf32>
    %188 = math.tanh %187 : vector<8x128xf32>
    %189 = arith.mulf %184, %188 : vector<8x128xf32>
    %c48 = arith.constant 48 : index
    %c0_52 = arith.constant 0 : index
    %190 = vector.load %arg13[%c48, %c0_52] : memref<64x512xf32, #tpu.memory_space<vmem>>, vector<8x512xf32>
    %191 = arith.truncf %189 : vector<8x128xf32> to vector<8x128xbf16>
    %c0_53 = arith.constant 0 : index
    %c0_54 = arith.constant 0 : index
    %192 = vector.load %arg3[%c0_53, %c0_54] : memref<128x512xbf16, #tpu.memory_space<vmem>>, vector<128x512xbf16>
    %cst_55 = arith.constant dense<0.000000e+00> : vector<8x512xf32>
    %193 = tpu.matmul %191, %192, %cst_55 {dimension_numbers = #tpu.dot_dimension_numbers<[1], [0], [0], [1], [0, 0, 1, 1], [], []>} : vector<8x128xbf16>, vector<128x512xbf16>, vector<8x512xf32> -> vector<8x512xf32>
    %194 = arith.addf %190, %193 : vector<8x512xf32>
    %195 = vector.extract_strided_slice %194 {offsets = [0, 0], sizes = [8, 128], strides = [1, 1]} : vector<8x512xf32> to vector<8x128xf32>
    %196 = arith.negf %195 : vector<8x128xf32>
    %197 = math.exp %196 : vector<8x128xf32>
    %cst_56 = arith.constant 1.000000e+00 : f32
    %198 = vector.broadcast %cst_56 : f32 to vector<8x128xf32>
    %199 = arith.addf %198, %197 : vector<8x128xf32>
    %200 = arith.divf %198, %199 : vector<8x128xf32>
    %201 = vector.extract_strided_slice %194 {offsets = [0, 128], sizes = [8, 128], strides = [1, 1]} : vector<8x512xf32> to vector<8x128xf32>
    %202 = arith.negf %201 : vector<8x128xf32>
    %203 = math.exp %202 : vector<8x128xf32>
    %cst_57 = arith.constant 1.000000e+00 : f32
    %204 = vector.broadcast %cst_57 : f32 to vector<8x128xf32>
    %205 = arith.addf %204, %203 : vector<8x128xf32>
    %206 = arith.divf %204, %205 : vector<8x128xf32>
    %207 = vector.extract_strided_slice %194 {offsets = [0, 256], sizes = [8, 128], strides = [1, 1]} : vector<8x512xf32> to vector<8x128xf32>
    %208 = math.tanh %207 : vector<8x128xf32>
    %209 = vector.extract_strided_slice %194 {offsets = [0, 384], sizes = [8, 128], strides = [1, 1]} : vector<8x512xf32> to vector<8x128xf32>
    %210 = arith.negf %209 : vector<8x128xf32>
    %211 = math.exp %210 : vector<8x128xf32>
    %cst_58 = arith.constant 1.000000e+00 : f32
    %212 = vector.broadcast %cst_58 : f32 to vector<8x128xf32>
    %213 = arith.addf %212, %211 : vector<8x128xf32>
    %214 = arith.divf %212, %213 : vector<8x128xf32>
    %215 = arith.mulf %206, %187 : vector<8x128xf32>
    %216 = arith.mulf %200, %208 : vector<8x128xf32>
    %217 = arith.addf %215, %216 : vector<8x128xf32>
    %218 = math.tanh %217 : vector<8x128xf32>
    %219 = arith.mulf %214, %218 : vector<8x128xf32>
    %c56 = arith.constant 56 : index
    %c0_59 = arith.constant 0 : index
    %220 = vector.load %arg13[%c56, %c0_59] : memref<64x512xf32, #tpu.memory_space<vmem>>, vector<8x512xf32>
    %221 = arith.truncf %219 : vector<8x128xf32> to vector<8x128xbf16>
    %c0_60 = arith.constant 0 : index
    %c0_61 = arith.constant 0 : index
    %222 = vector.load %arg3[%c0_60, %c0_61] : memref<128x512xbf16, #tpu.memory_space<vmem>>, vector<128x512xbf16>
    %cst_62 = arith.constant dense<0.000000e+00> : vector<8x512xf32>
    %223 = tpu.matmul %221, %222, %cst_62 {dimension_numbers = #tpu.dot_dimension_numbers<[1], [0], [0], [1], [0, 0, 1, 1], [], []>} : vector<8x128xbf16>, vector<128x512xbf16>, vector<8x512xf32> -> vector<8x512xf32>
    %224 = arith.addf %220, %223 : vector<8x512xf32>
    %225 = vector.extract_strided_slice %224 {offsets = [0, 0], sizes = [8, 128], strides = [1, 1]} : vector<8x512xf32> to vector<8x128xf32>
    %226 = arith.negf %225 : vector<8x128xf32>
    %227 = math.exp %226 : vector<8x128xf32>
    %cst_63 = arith.constant 1.000000e+00 : f32
    %228 = vector.broadcast %cst_63 : f32 to vector<8x128xf32>
    %229 = arith.addf %228, %227 : vector<8x128xf32>
    %230 = arith.divf %228, %229 : vector<8x128xf32>
    %231 = vector.extract_strided_slice %224 {offsets = [0, 128], sizes = [8, 128], strides = [1, 1]} : vector<8x512xf32> to vector<8x128xf32>
    %232 = arith.negf %231 : vector<8x128xf32>
    %233 = math.exp %232 : vector<8x128xf32>
    %cst_64 = arith.constant 1.000000e+00 : f32
    %234 = vector.broadcast %cst_64 : f32 to vector<8x128xf32>
    %235 = arith.addf %234, %233 : vector<8x128xf32>
    %236 = arith.divf %234, %235 : vector<8x128xf32>
    %237 = vector.extract_strided_slice %224 {offsets = [0, 256], sizes = [8, 128], strides = [1, 1]} : vector<8x512xf32> to vector<8x128xf32>
    %238 = math.tanh %237 : vector<8x128xf32>
    %239 = vector.extract_strided_slice %224 {offsets = [0, 384], sizes = [8, 128], strides = [1, 1]} : vector<8x512xf32> to vector<8x128xf32>
    %240 = arith.negf %239 : vector<8x128xf32>
    %241 = math.exp %240 : vector<8x128xf32>
    %cst_65 = arith.constant 1.000000e+00 : f32
    %242 = vector.broadcast %cst_65 : f32 to vector<8x128xf32>
    %243 = arith.addf %242, %241 : vector<8x128xf32>
    %244 = arith.divf %242, %243 : vector<8x128xf32>
    %245 = arith.mulf %236, %217 : vector<8x128xf32>
    %246 = arith.mulf %230, %238 : vector<8x128xf32>
    %247 = arith.addf %245, %246 : vector<8x128xf32>
    %248 = math.tanh %247 : vector<8x128xf32>
    %249 = arith.mulf %244, %248 : vector<8x128xf32>
    %c0_66 = arith.constant 0 : index
    %c0_67 = arith.constant 0 : index
    %250 = vector.load %arg1[%c0_66, %c0_67] : memref<8x32xf32, #tpu.memory_space<vmem>>, vector<8x32xf32>
    %251 = arith.truncf %250 : vector<8x32xf32> to vector<8x32xbf16>
    %252 = arith.truncf %249 : vector<8x128xf32> to vector<8x128xbf16>
    %c0_68 = arith.constant 0 : index
    %c0_69 = arith.constant 0 : index
    %253 = vector.load %arg5[%c0_68, %c0_69] : memref<128x160xbf16, #tpu.memory_space<vmem>>, vector<128x160xbf16>
    %cst_70 = arith.constant dense<0.000000e+00> : vector<8x160xf32>
    %254 = tpu.matmul %252, %253, %cst_70 {dimension_numbers = #tpu.dot_dimension_numbers<[1], [0], [0], [1], [0, 0, 1, 1], [], []>} : vector<8x128xbf16>, vector<128x160xbf16>, vector<8x160xf32> -> vector<8x160xf32>
    %c0_71 = arith.constant 0 : index
    %c0_72 = arith.constant 0 : index
    %255 = vector.load %arg6[%c0_71, %c0_72] : memref<32x160xbf16, #tpu.memory_space<vmem>>, vector<32x160xbf16>
    %cst_73 = arith.constant dense<0.000000e+00> : vector<8x160xf32>
    %256 = tpu.matmul %251, %255, %cst_73 {dimension_numbers = #tpu.dot_dimension_numbers<[1], [0], [0], [1], [0, 0, 1, 1], [], []>} : vector<8x32xbf16>, vector<32x160xbf16>, vector<8x160xf32> -> vector<8x160xf32>
    %257 = arith.addf %254, %256 : vector<8x160xf32>
    %c0_74 = arith.constant 0 : index
    %c0_75 = arith.constant 0 : index
    %258 = vector.load %arg7[%c0_74, %c0_75] : memref<1x160xf32, #tpu.memory_space<vmem>>, vector<1x160xf32>
    %259 = vector.broadcast %258 : vector<1x160xf32> to vector<8x160xf32>
    %260 = arith.addf %257, %259 : vector<8x160xf32>
    %261 = math.tanh %260 : vector<8x160xf32>
    %262 = arith.truncf %261 : vector<8x160xf32> to vector<8x160xbf16>
    %c0_76 = arith.constant 0 : index
    %c0_77 = arith.constant 0 : index
    %263 = vector.load %arg8[%c0_76, %c0_77] : memref<160x160xbf16, #tpu.memory_space<vmem>>, vector<160x160xbf16>
    %cst_78 = arith.constant dense<0.000000e+00> : vector<8x160xf32>
    %264 = tpu.matmul %262, %263, %cst_78 {dimension_numbers = #tpu.dot_dimension_numbers<[1], [0], [0], [1], [0, 0, 1, 1], [], []>} : vector<8x160xbf16>, vector<160x160xbf16>, vector<8x160xf32> -> vector<8x160xf32>
    %c0_79 = arith.constant 0 : index
    %c0_80 = arith.constant 0 : index
    %265 = vector.load %arg9[%c0_79, %c0_80] : memref<1x160xf32, #tpu.memory_space<vmem>>, vector<1x160xf32>
    %266 = vector.broadcast %265 : vector<1x160xf32> to vector<8x160xf32>
    %267 = arith.addf %264, %266 : vector<8x160xf32>
    %268 = math.tanh %267 : vector<8x160xf32>
    %269 = arith.truncf %268 : vector<8x160xf32> to vector<8x160xbf16>
    %c0_81 = arith.constant 0 : index
    %c0_82 = arith.constant 0 : index
    %270 = vector.load %arg10[%c0_81, %c0_82] : memref<160x128xbf16, #tpu.memory_space<vmem>>, vector<160x128xbf16>
    %cst_83 = arith.constant dense<0.000000e+00> : vector<8x128xf32>
    %271 = tpu.matmul %269, %270, %cst_83 {dimension_numbers = #tpu.dot_dimension_numbers<[1], [0], [0], [1], [0, 0, 1, 1], [], []>} : vector<8x160xbf16>, vector<160x128xbf16>, vector<8x128xf32> -> vector<8x128xf32>
    %c0_84 = arith.constant 0 : index
    %c0_85 = arith.constant 0 : index
    %272 = vector.load %arg11[%c0_84, %c0_85] : memref<1x128xf32, #tpu.memory_space<vmem>>, vector<1x128xf32>
    %273 = vector.broadcast %272 : vector<1x128xf32> to vector<8x128xf32>
    %274 = arith.addf %271, %273 : vector<8x128xf32>
    %c0_86 = arith.constant 0 : index
    %c0_87 = arith.constant 0 : index
    %275 = vector.load %arg12[%c0_86, %c0_87] : memref<8x128xf32, #tpu.memory_space<vmem>>, vector<8x128xf32>
    tpu.vector_store %arg12[%c0_86, %c0_87], %274 {strides = array<i32>} : memref<8x128xf32, #tpu.memory_space<vmem>>, vector<8x128xf32>,
    return
  }
}

</mosaic_0001>

<bundles_post_ra>
// kernel: tpu_custom_call.1
= control target key start
LH: loop header
LB: loop body
LE: loop exit
PB: predicated region body
PF: predicated region fallthrough
CT: control target
= control target key end

     0   :  { %17 = vsyncpa [#allocation4], 0  ;;  %s3782_s0 = inlined_call_operand.hbm [shape: f32[64,128], index: 0, kind: input, shape index: {}]   ;;  %s3783_s1 = inlined_call_operand.hbm [shape: f32[8,32], index: 1, kind: input, shape index: {}]   ;;  %s3784_s2 = inlined_call_operand.hbm [shape: bf16[128,512], index: 2, kind: input, shape index: {}]   ;;  %s3785_s3 = inlined_call_operand.hbm [shape: bf16[128,512], index: 3, kind: input, shape index: {}]   ;;  %s3786_s4 = inlined_call_operand.hbm [shape: f32[1,512], index: 4, kind: input, shape index: {}]   ;;  %s3787_s5 = inlined_call_operand.vmem [shape: bf16[128,160], index: 5, kind: input, shape index: {}]   ;;  %s3788_s6 = inlined_call_operand.hbm [shape: bf16[32,160], index: 6, kind: input, shape index: {}]   ;;  %s3789_s7 = inlined_call_operand.vmem [shape: f32[1,160], index: 7, kind: input, shape index: {}]   ;;  %s3790_s8 = inlined_call_operand.vmem [shape: bf16[160,160], index: 8, kind: input, shape index: {}]   ;;  %s3791_s9 = inlined_call_operand.hbm [shape: f32[1,160], index: 9, kind: input, shape index: {}]   ;;  %s3792_s10 = inlined_call_operand.vmem [shape: bf16[160,128], index: 10, kind: input, shape index: {}]   ;;  %s3793_s11 = inlined_call_operand.vmem [shape: f32[1,128], index: 11, kind: input, shape index: {}]   ;;  %s3794_s12 = inlined_call_operand.hbm [shape: f32[8,128], index: 12, kind: output, shape index: {}]  }
   0x1   :  { %18 = vsyncpa [#allocation7], 0 }
   0x2   :  { %19 = vsyncpa [#allocation10], 0 }
   0x3   :  { %20 = vsyncpa [#allocation13], 0 }
   0x4   :  { %21 = vsyncpa [#allocation5], 0  ;;  %s2878_s21 = smov [#allocation6]   ;;  %s2692_s25 = scalar_lea.hbm %s3783_s1, 128 }
   0x5   :  { %s40_s22 = sshll.u32 %s2878_s21, 4  ;;  %p2693_p0 = scmp.ne.s32.totalorder %s3783_s1, %s2692_s25  ;;  %s41_s22 = int_to_ptr.vmem [resolvable:$true] %s40_s22 }
   0x6   :  { %p2696_p1 = scmp.lt.u32.totalorder %s2692_s25, %s3783_s1 }
   0x8   :  { %p2698_p2 = pnand %p2696_p1, %p2693_p0 }
   0xa   :  { %2701 = shalt.err (!%p2698_p2)
}
   0xb   :  { %s2702_s30 = scalar_lea.vmem %s41_s22, 128  ;;  %p2707_p4 = scmp.lt.s32.totalorder %s41_s22, %s41_s22 }
   0xc   :  { %p2703_p3 = scmp.ne.s32.totalorder %s41_s22, %s2702_s30  ;;  %p2708_p5 = scmp.lt.s32.totalorder %s2702_s30, %s2702_s30 }
   0xe   :  { %p2709_p6 = por %p2708_p5, %p2707_p4 }
  0x10   :  { %p2710_p7 = pnand %p2709_p6, %p2703_p3 }
  0x12   :  { %2713 = shalt.err (!%p2710_p7)
}
  0x13   :  { %43 = dma.hbm_to_vmem [thread:$0]  %s3783_s1, 128, %s41_s22, [#allocation7]  }
  0x14   :  { %s2879_s15 = smov [#allocation9]   ;;  %s2714_s19 = scalar_lea.hbm %s3785_s3, 4096 }
  0x15   :  { %s61_s16 = sshll.u32 %s2879_s15, 4  ;;  %p2715_p8 = scmp.ne.s32.totalorder %s3785_s3, %s2714_s19  ;;  %s62_s16 = int_to_ptr.vmem [resolvable:$true] %s61_s16 }
  0x16   :  { %p2718_p9 = scmp.lt.u32.totalorder %s2714_s19, %s3785_s3 }
  0x18   :  { %p2720_p10 = pnand %p2718_p9, %p2715_p8 }
  0x1a   :  { %2723 = shalt.err (!%p2720_p10)
}
  0x1b   :  { %s2724_s25 = scalar_lea.vmem %s62_s16, 4096  ;;  %p2729_p12 = scmp.lt.s32.totalorder %s62_s16, %s62_s16 }
  0x1c   :  { %p2725_p11 = scmp.ne.s32.totalorder %s62_s16, %s2724_s25  ;;  %p2730_p13 = scmp.lt.s32.totalorder %s2724_s25, %s2724_s25 }
  0x1e   :  { %p2731_p0 = por %p2730_p13, %p2729_p12 }
  0x20   :  { %p2732_p1 = pnand %p2731_p0, %p2725_p11 }
  0x22   :  { %2735 = shalt.err (!%p2732_p1)
}
  0x23   :  { %s2880_s1 = smov 256   ;;  %s2881_s22 = smov 16  }
  0x24   :  { %67 = dma.hbm_to_vmem [thread:$0]  %s3785_s3, 4096, %s62_s16, [#allocation10], %s2880_s1, %s2880_s1, %s2881_s22  }
  0x25   :  { %s2882_s28 = smov [#allocation12]   ;;  %s2883_s30 = smov [#allocation3]  }
  0x26   :  { %s85_s29 = sshll.u32 %s2882_s28, 4  ;;  %s27_s13 = sshll.u32 %s2883_s30, 4  ;;  %s86_s29 = int_to_ptr.vmem [resolvable:$true] %s85_s29  ;;  %s2983_s13 = int_to_ptr.vmem [resolvable:$true] %s27_s13 }
  0x27   :  { %s2736_s17 = scalar_lea.hbm %s3788_s6, 512 }
  0x28   :  { %p2737_p2 = scmp.ne.s32.totalorder %s3788_s6, %s2736_s17  ;;  %p2740_p3 = scmp.lt.u32.totalorder %s2736_s17, %s3788_s6 }
  0x2a   :  { %p2742_p4 = pnand %p2740_p3, %p2737_p2 }
  0x2c   :  { %2745 = shalt.err (!%p2742_p4)
}
  0x2d   :  { %s2746_s3 = scalar_lea.vmem %s86_s29, 512  ;;  %p2751_p6 = scmp.lt.s32.totalorder %s86_s29, %s86_s29 }
  0x2e   :  { %p2747_p5 = scmp.ne.s32.totalorder %s86_s29, %s2746_s3  ;;  %p2752_p7 = scmp.lt.s32.totalorder %s2746_s3, %s2746_s3 }
  0x30   :  { %p2753_p8 = por %p2752_p7, %p2751_p6 }
  0x32   :  { %p2754_p9 = pnand %p2753_p8, %p2747_p5 }
  0x34   :  { %2757 = shalt.err (!%p2754_p9)
}
  0x35   :  { %s2884_s16 = smov 128   ;;  %s2885_s23 = smov 8  }
  0x36   :  { %91 = dma.hbm_to_vmem [thread:$0]  %s3788_s6, 512, %s86_s29, [#allocation13], %s2884_s16, %s2884_s16, %s2885_s23  }
  0x37   :  { %s2758_s28 = scalar_lea.hbm %s3782_s0, 1024 }
  0x38   :  { %p2759_p10 = scmp.ne.s32.totalorder %s3782_s0, %s2758_s28  ;;  %p2762_p11 = scmp.lt.u32.totalorder %s2758_s28, %s3782_s0 }
  0x3a   :  { %p2764_p12 = pnand %p2762_p11, %p2759_p10 }
  0x3c   :  { %2767 = shalt.err (!%p2764_p12)
}
  0x3d   :  { %s2768_s18 = scalar_lea.vmem %s2983_s13, 1024  ;;  %p2773_p0 = scmp.lt.s32.totalorder %s2983_s13, %s2983_s13 }
  0x3e   :  { %p2769_p13 = scmp.ne.s32.totalorder %s2983_s13, %s2768_s18  ;;  %p2774_p1 = scmp.lt.s32.totalorder %s2768_s18, %s2768_s18 }
  0x40   :  { %p2775_p2 = por %p2774_p1, %p2773_p0 }
  0x42   :  { %p2776_p3 = pnand %p2775_p2, %p2769_p13 }
  0x44   :  { %2779 = shalt.err (!%p2776_p3)
}
  0x45   :  { %33 = dma.hbm_to_vmem [thread:$0]  %s3782_s0, 1024, %s2983_s13, [#allocation4], %s2884_s16, %s2884_s16, %s2885_s23  }
  0x46   :  { %s2886_s19 = smov [#allocation8]   ;;  %s2887_s21 = smov [#allocation11]  }
  0x47   :  { %s49_s20 = sshll.u32 %s2886_s19, 4  ;;  %s74_s3 = sshll.u32 %s2887_s21, 4  ;;  %s50_s20 = int_to_ptr.vmem [resolvable:$true] %s49_s20  ;;  %s75_s3 = int_to_ptr.vmem [resolvable:$true] %s74_s3 }
  0x48   :  { %s2780_s26 = scalar_lea.hbm %s3784_s2, 4096 }
  0x49   :  { %p2781_p4 = scmp.ne.s32.totalorder %s3784_s2, %s2780_s26  ;;  %p2784_p5 = scmp.lt.u32.totalorder %s2780_s26, %s3784_s2 }
  0x4b   :  { %p2786_p6 = pnand %p2784_p5, %p2781_p4 }
  0x4d   :  { %2789 = shalt.err (!%p2786_p6)
}
  0x4e   :  { %s2790_s0 = scalar_lea.vmem %s50_s20, 4096  ;;  %p2795_p8 = scmp.lt.s32.totalorder %s50_s20, %s50_s20 }
  0x4f   :  { %p2791_p7 = scmp.ne.s32.totalorder %s50_s20, %s2790_s0  ;;  %p2796_p9 = scmp.lt.s32.totalorder %s2790_s0, %s2790_s0 }
  0x51   :  { %p2797_p10 = por %p2796_p9, %p2795_p8 }
  0x53   :  { %p2798_p11 = pnand %p2797_p10, %p2791_p7 }
  0x55   :  { %2801 = shalt.err (!%p2798_p11)
}
  0x56   :  { %55 = dma.hbm_to_vmem [thread:$0]  %s3784_s2, 4096, %s50_s20, [#allocation7], %s2880_s1, %s2880_s1, %s2881_s22  }
  0x57   :  { %s2802_s17 = scalar_lea.hbm %s3786_s4, 64 }
  0x58   :  { %p2803_p12 = scmp.ne.s32.totalorder %s3786_s4, %s2802_s17  ;;  %p2806_p13 = scmp.lt.u32.totalorder %s2802_s17, %s3786_s4 }
  0x5a   :  { %p2808_p0 = pnand %p2806_p13, %p2803_p12 }
  0x5c   :  { %2811 = shalt.err (!%p2808_p0)
}
  0x5d   :  { %s2812_s21 = scalar_lea.vmem %s75_s3, 64  ;;  %p2817_p2 = scmp.lt.s32.totalorder %s75_s3, %s75_s3 }
  0x5e   :  { %p2813_p1 = scmp.ne.s32.totalorder %s75_s3, %s2812_s21  ;;  %p2818_p3 = scmp.lt.s32.totalorder %s2812_s21, %s2812_s21 }
  0x60   :  { %p2819_p4 = por %p2818_p3, %p2817_p2 }
  0x62   :  { %p2820_p5 = pnand %p2819_p4, %p2813_p1 }
  0x64   :  { %2823 = shalt.err (!%p2820_p5)
}
  0x65   :  { %77 = dma.hbm_to_vmem [thread:$0]  %s3786_s4, 64, %s75_s3, [#allocation10]  }
  0x66   :  { %s2888_s22 = smov [#allocation14]   ;;  %s2824_s26 = scalar_lea.hbm %s3791_s9, 32 }
  0x67   :  { %s102_s20 = sshll.u32 %s2888_s22, 4  ;;  %p2825_p6 = scmp.ne.s32.totalorder %s3791_s9, %s2824_s26  ;;  %s103_s20 = int_to_ptr.vmem [resolvable:$true] %s102_s20 }
  0x68   :  { %p2828_p7 = scmp.lt.u32.totalorder %s2824_s26, %s3791_s9 }
  0x6a   :  { %p2830_p8 = pnand %p2828_p7, %p2825_p6 }
  0x6c   :  { %2833 = shalt.err (!%p2830_p8)
}
  0x6d   :  { %s2834_s0 = scalar_lea.vmem %s103_s20, 32  ;;  %p2839_p10 = scmp.lt.s32.totalorder %s103_s20, %s103_s20 }
  0x6e   :  { %p2835_p9 = scmp.ne.s32.totalorder %s103_s20, %s2834_s0  ;;  %p2840_p11 = scmp.lt.s32.totalorder %s2834_s0, %s2834_s0 }
  0x70   :  { %p2841_p12 = por %p2840_p11, %p2839_p10 }
  0x72   :  { %p2842_p13 = pnand %p2841_p12, %p2835_p9 }
  0x74   :  { %2845 = shalt.err (!%p2842_p13)
}
  0x75   :  { %105 = dma.hbm_to_vmem [thread:$0]  %s3791_s9, 32, %s103_s20, [#allocation13]  }
  0x76   :  { %2868 = dma.done.wait [#allocation4], 1024  }
  0x77   :  { %2869 = vsyncadd [#allocation4], 4294966272 }
  0x78   :  { %2870 = dma.done.wait [#allocation7], 4224  }
  0x79   :  { %2871 = vsyncadd [#allocation7], 4294963072 }
  0x7a   :  { %2872 = dma.done.wait [#allocation10], 4160  }
  0x7b   :  { %2873 = vsyncadd [#allocation10], 4294963136 }
  0x7c   :  { %2874 = dma.done.wait [#allocation13], 544  }
  0x7d   :  { %2875 = vsyncadd [#allocation13], 4294966752  ;;  %v3795_v0 = vmov 0   ;;  %v2358_v1 = vld [vmem:[#allocation8 + $0x4] ss:$16 sps:$4 sm:$0xff]   ;;  %v132_v33 = vld [vmem:[#allocation3] sm:$0xff] }
  0x7e   :  { %390 = vmatprep.mubr.bf16.mxu0 %v3795_v0  ;;  %463 = vmatprep.mubr.bf16.mxu1 %v3795_v0  ;;  %v2360_v2 = vld [vmem:[#allocation8 + $0xc] ss:$16 sps:$4 sm:$0xff]   ;;  %v2362_v3 = vld [vmem:[#allocation8] ss:$16 sps:$4 sm:$0xff]   ;;  %v2363_v4 = vld [vmem:[#allocation8 + $0x8] ss:$16 sps:$4 sm:$0xff]  }
  0x7f   :  { %358 = vmatprep.subr.bf16.mxu0 %v2358_v1  ;;  %431 = vmatprep.subr.bf16.mxu1 %v2360_v2  ;;  %v2364_v5 = vld [vmem:[#allocation8 + $0x24] ss:$16 sps:$4 sm:$0xff]   ;;  %v2366_v6 = vld [vmem:[#allocation8 + $0x2c] ss:$16 sps:$4 sm:$0xff]   ;;  %v2368_v7 = vld [vmem:[#allocation8 + $0x20] ss:$16 sps:$4 sm:$0xff]  }
  0x80   :  { %359 = vmatpush1.bf16.msra.mxu0 %v2362_v3  ;;  %432 = vmatpush1.bf16.msra.mxu1 %v2363_v4  ;;  %v2369_v8 = vld [vmem:[#allocation8 + $0x28] ss:$16 sps:$4 sm:$0xff]   ;;  %v2370_v9 = vld [vmem:[#allocation8 + $0x44] ss:$16 sps:$4 sm:$0xff]   ;;  %v2372_v10 = vld [vmem:[#allocation8 + $0x4c] ss:$16 sps:$4 sm:$0xff]  }
  0x81   :  { %360 = vmatprep.subr.bf16.mxu0 %v2364_v5  ;;  %433 = vmatprep.subr.bf16.mxu1 %v2366_v6  ;;  %v2374_v11 = vld [vmem:[#allocation8 + $0x40] ss:$16 sps:$4 sm:$0xff]   ;;  %v2375_v12 = vld [vmem:[#allocation8 + $0x48] ss:$16 sps:$4 sm:$0xff]   ;;  %v2376_v13 = vld [vmem:[#allocation8 + $0x64] ss:$16 sps:$4 sm:$0xff]  }
  0x82   :  { %v2378_v14 = vld [vmem:[#allocation8 + $0x6c] ss:$16 sps:$4 sm:$0xff]   ;;  %v2380_v15 = vld [vmem:[#allocation8 + $0x60] ss:$16 sps:$4 sm:$0xff]   ;;  %v2381_v16 = vld [vmem:[#allocation8 + $0x68] ss:$16 sps:$4 sm:$0xff]  }
  0x83   :  { %v2382_v17 = vld [vmem:[#allocation8 + $0x84] ss:$16 sps:$4 sm:$0xff]   ;;  %v2384_v18 = vld [vmem:[#allocation8 + $0x8c] ss:$16 sps:$4 sm:$0xff]   ;;  %v2386_v19 = vld [vmem:[#allocation8 + $0x80] ss:$16 sps:$4 sm:$0xff]  }
  0x84   :  { %361 = vmatpush1.bf16.msra.mxu0 %v2368_v7  ;;  %434 = vmatpush1.bf16.msra.mxu1 %v2369_v8  ;;  %v2387_v20 = vld [vmem:[#allocation8 + $0x88] ss:$16 sps:$4 sm:$0xff]   ;;  %v2388_v21 = vld [vmem:[#allocation8 + $0xa4] ss:$16 sps:$4 sm:$0xff]   ;;  %v2390_v22 = vld [vmem:[#allocation8 + $0xac] ss:$16 sps:$4 sm:$0xff]  }
  0x85   :  { %362 = vmatprep.subr.bf16.mxu0 %v2370_v9  ;;  %435 = vmatprep.subr.bf16.mxu1 %v2372_v10  ;;  %v2392_v23 = vld [vmem:[#allocation8 + $0xa0] ss:$16 sps:$4 sm:$0xff]   ;;  %v2393_v24 = vld [vmem:[#allocation8 + $0xa8] ss:$16 sps:$4 sm:$0xff]   ;;  %v2394_v25 = vld [vmem:[#allocation8 + $0xc4] ss:$16 sps:$4 sm:$0xff]  }
  0x86   :  { %v2396_v26 = vld [vmem:[#allocation8 + $0xcc] ss:$16 sps:$4 sm:$0xff]   ;;  %v2398_v27 = vld [vmem:[#allocation8 + $0xc0] ss:$16 sps:$4 sm:$0xff]   ;;  %v2399_v28 = vld [vmem:[#allocation8 + $0xc8] ss:$16 sps:$4 sm:$0xff]  }
  0x87   :  { %v2400_v29 = vld [vmem:[#allocation8 + $0xe4] ss:$16 sps:$4 sm:$0xff]   ;;  %v2402_v30 = vld [vmem:[#allocation8 + $0xec] ss:$16 sps:$4 sm:$0xff]   ;;  %v2404_v31 = vld [vmem:[#allocation8 + $0xe0] ss:$16 sps:$4 sm:$0xff]  }
  0x88   :  { %363 = vmatpush1.bf16.msra.mxu0 %v2374_v11  ;;  %436 = vmatpush1.bf16.msra.mxu1 %v2375_v12  ;;  %v2405_v32 = vld [vmem:[#allocation8 + $0xe8] ss:$16 sps:$4 sm:$0xff]   ;;  %v133_v34 = vld [vmem:[#allocation3 + $0x8] sm:$0xff]  ;;  %v3057_v36 = vld [vmem:[#allocation9 + $0xc] ss:$16 sps:$4 sm:$0xff]   ;;  %vm1690_vm0 = vcmask 261120  }
  0x89   :  { %364 = vmatprep.subr.bf16.mxu0 %v2376_v13  ;;  %437 = vmatprep.subr.bf16.mxu1 %v2378_v14  ;;  %v3055_v35 = vld [vmem:[#allocation9 + $0x4] ss:$16 sps:$4 sm:$0xff]   ;;  %v140_v37 = vpack.c.bf16 %v133_v34, %v132_v33  ;;  %v3059_v38 = vld [vmem:[#allocation9] ss:$16 sps:$4 sm:$0xff]   ;;  %v3061_v39 = vld [vmem:[#allocation9 + $0x8] ss:$16 sps:$4 sm:$0xff]   ;;  %v178_v14 = vlaneseq }
  0x8a   :  { %v3065_v40 = vld [vmem:[#allocation9 + $0x24] ss:$16 sps:$4 sm:$0xff]   ;;  %v3067_v41 = vld [vmem:[#allocation9 + $0x2c] ss:$16 sps:$4 sm:$0xff]   ;;  %v3069_v42 = vld [vmem:[#allocation9 + $0x20] ss:$16 sps:$4 sm:$0xff]  }
  0x8b   :  { %v3071_v43 = vld [vmem:[#allocation9 + $0x28] ss:$16 sps:$4 sm:$0xff]   ;;  %v135_v45 = vld [vmem:[#allocation3 + $0x18] sm:$0xff]  ;;  %v3079_v47 = vld [vmem:[#allocation9 + $0x4c] ss:$16 sps:$4 sm:$0xff]   ;;  %s2890_s24 = smov [#allocation15]  }
  0x8c   :  { %365 = vmatpush1.bf16.msra.mxu0 %v2380_v15  ;;  %438 = vmatpush1.bf16.msra.mxu1 %v2381_v16  ;;  %v134_v44 = vld [vmem:[#allocation3 + $0x10] sm:$0xff]  ;;  %v3075_v46 = vld [vmem:[#allocation9 + $0x44] ss:$16 sps:$4 sm:$0xff]   ;;  %v3083_v49 = vld [vmem:[#allocation9 + $0x40] ss:$16 sps:$4 sm:$0xff]   ;;  %v179_v15 = vshrl.u32 %v178_v14, 7 }
  0x8d   :  { %366 = vmatprep.subr.bf16.mxu0 %v2382_v17  ;;  %439 = vmatprep.subr.bf16.mxu1 %v2384_v18  ;;  %v141_v48 = vpack.c.bf16 %v135_v45, %v134_v44  ;;  %v3085_v50 = vld [vmem:[#allocation9 + $0x48] ss:$16 sps:$4 sm:$0xff]   ;;  %v3089_v51 = vld [vmem:[#allocation9 + $0x64] ss:$16 sps:$4 sm:$0xff]   ;;  %v3093_v52 = vld [vmem:[#allocation9 + $0x6c] ss:$16 sps:$4 sm:$0xff]  }
  0x8e   :  { %v3095_v53 = vld [vmem:[#allocation9 + $0x60] ss:$16 sps:$4 sm:$0xff]   ;;  %v3097_v54 = vld [vmem:[#allocation9 + $0x68] ss:$16 sps:$4 sm:$0xff]   ;;  %v3103_v57 = vld [vmem:[#allocation9 + $0x84] ss:$16 sps:$4 sm:$0xff]  }
  0x8f   :  { %v136_v55 = vld [vmem:[#allocation3 + $0x20] sm:$0xff]  ;;  %v137_v56 = vld [vmem:[#allocation3 + $0x28] sm:$0xff]  ;;  %v138_v3 = vld [vmem:[#allocation3 + $0x30] sm:$0xff]  ;;  %v188_v16 = vsub.s32 2, %v179_v15  ;;  %v192_v17 = vsub.s32 3, %v179_v15  ;;  %v3197_v18 = vsub.s32 0, %v179_v15 }
  0x90   :  { %367 = vmatpush1.bf16.msra.mxu0 %v2386_v19  ;;  %440 = vmatpush1.bf16.msra.mxu1 %v2387_v20  ;;  %v3105_v58 = vld [vmem:[#allocation9 + $0x8c] ss:$16 sps:$4 sm:$0xff]   ;;  %v3109_v59 = vld [vmem:[#allocation9 + $0x80] ss:$16 sps:$4 sm:$0xff]   ;;  %v3111_v60 = vld [vmem:[#allocation9 + $0x88] ss:$16 sps:$4 sm:$0xff]   ;;  %v142_v61 = vpack.c.bf16 %v137_v56, %v136_v55 }
  0x91   :  { %368 = vmatprep.subr.bf16.mxu0 %v2388_v21  ;;  %441 = vmatprep.subr.bf16.mxu1 %v2390_v22  ;;  %v3113_v62 = vld [vmem:[#allocation9 + $0xa4] ss:$16 sps:$4 sm:$0xff]   ;;  %v3115_v63 = vld [vmem:[#allocation9 + $0xac] ss:$16 sps:$4 sm:$0xff]   ;;  %v3121_v1 = vld [vmem:[#allocation9 + $0xa0] ss:$16 sps:$4 sm:$0xff]  }
  0x92   :  { %v3123_v2 = vld [vmem:[#allocation9 + $0xa8] ss:$16 sps:$4 sm:$0xff]   ;;  %v139_v4 = vld [vmem:[#allocation3 + $0x38] sm:$0xff]  ;;  %v3127_v6 = vld [vmem:[#allocation9 + $0xcc] ss:$16 sps:$4 sm:$0xff]   ;;  %3801 = vst [vmem:[#allocation21_spill] sm:$0xff] %v3197_v18 }
  0x93   :  { %v3125_v5 = vld [vmem:[#allocation9 + $0xc4] ss:$16 sps:$4 sm:$0xff]   ;;  %v3135_v7 = vld [vmem:[#allocation9 + $0xc0] ss:$16 sps:$4 sm:$0xff]   ;;  %v3137_v8 = vld [vmem:[#allocation9 + $0xc8] ss:$16 sps:$4 sm:$0xff]   ;;  %v143_v9 = vpack.c.bf16 %v139_v4, %v138_v3 }
  0x94   :  { %369 = vmatpush1.bf16.msra.mxu0 %v2392_v23  ;;  %442 = vmatpush1.bf16.msra.mxu1 %v2393_v24  ;;  %v3139_v10 = vld [vmem:[#allocation9 + $0xe4] ss:$16 sps:$4 sm:$0xff]   ;;  %v3141_v11 = vld [vmem:[#allocation9 + $0xec] ss:$16 sps:$4 sm:$0xff]   ;;  %v3147_v12 = vld [vmem:[#allocation9 + $0xe0] ss:$16 sps:$4 sm:$0xff]  }
  0x95   :  { %370 = vmatprep.subr.bf16.mxu0 %v2394_v25  ;;  %443 = vmatprep.subr.bf16.mxu1 %v2396_v26  ;;  %v3149_v13 = vld [vmem:[#allocation9 + $0xe8] ss:$16 sps:$4 sm:$0xff]   ;;  %v176_v19 = vld [vmem:[#allocation11] sm:$0xf]  ;;  %v3199_v20 = vsub.s32 1, %v179_v15  ;;  %s2191_s25 = sshll.u32 %s2890_s24, 4  ;;  %s2192_s25 = int_to_ptr.vmem [resolvable:$true] %s2191_s25 }
  0x96   :  { %v3201_v21 = vrot.slane %v176_v19, %v188_v16  ;;  %v3207_v24 = vrot.slane %v176_v19, %v192_v17  ;;  %v181_v25 = vrot.slane %v176_v19, %v3197_v18  ;;  %s2846_s26 = scalar_lea.vmem %s2192_s25, 128  ;;  %p2851_p1 = scmp.lt.s32.totalorder %s2192_s25, %s2192_s25 }
  0x97   :  { %3802 = vst [vmem:[#allocation22_spill] sm:$0xff] %v3199_v20  ;;  %p2847_p0 = scmp.ne.s32.totalorder %s2192_s25, %s2846_s26  ;;  %p2852_p2 = scmp.lt.s32.totalorder %s2846_s26, %s2846_s26 }
  0x98   :  { %371 = vmatpush1.bf16.msra.mxu0 %v2398_v27  ;;  %444 = vmatpush1.bf16.msra.mxu1 %v2399_v28  ;;  %v185_v28 = vrot.slane %v176_v19, %v3199_v20 }
  0x99   :  { %372 = vmatprep.subr.bf16.mxu0 %v2400_v29  ;;  %445 = vmatprep.subr.bf16.mxu1 %v2402_v30  ;;  %p2853_p3 = por %p2852_p2, %p2851_p1 }
  0x9b   :  { %p2854_p4 = pnand %p2853_p3, %p2847_p0 }
  0x9c   :  { %373 = vmatpush1.bf16.msra.mxu0 %v2404_v31  ;;  %446 = vmatpush1.bf16.msra.mxu1 %v2405_v32 }
  0x9d   :  { %732 = vmatprep.subr.bf16.mxu0 %v3055_v35  ;;  %773 = vmatprep.subr.bf16.mxu1 %v3057_v36 }
  0x9f   :  { %391 = vmatmul.mubr.bf16.vlgmr.msra.gmra.mrb[0].mxu0 %v140_v37  ;;  %464 = vmatmul.mubr.bf16.vlgmr.msra.gmra.mrb[0].mxu1 %v140_v37 }
  0xa0   :  { %733 = vmatpush1.bf16.msra.mxu0 %v3059_v38  ;;  %774 = vmatpush1.bf16.msra.mxu1 %v3061_v39 }
  0xa1   :  { %734 = vmatprep.subr.bf16.mxu0 %v3065_v40  ;;  %775 = vmatprep.subr.bf16.mxu1 %v3067_v41 }
  0xa2   :  { %400 = vmatprep.mubr.bf16.mxu0 %v3795_v0  ;;  %473 = vmatprep.mubr.bf16.mxu1 %v3795_v0 }
  0xa4   :  { %735 = vmatpush1.bf16.msra.mxu0 %v3069_v42  ;;  %776 = vmatpush1.bf16.msra.mxu1 %v3071_v43 }
  0xa5   :  { %736 = vmatprep.subr.bf16.mxu0 %v3075_v46  ;;  %777 = vmatprep.subr.bf16.mxu1 %v3079_v47 }
  0xa7   :  { %401 = vmatmul.mubr.bf16.gmra.mrb[4].mxu0 %v141_v48  ;;  %474 = vmatmul.mubr.bf16.gmra.mrb[4].mxu1 %v141_v48 }
  0xa8   :  { %737 = vmatpush1.bf16.msra.mxu0 %v3083_v49  ;;  %778 = vmatpush1.bf16.msra.mxu1 %v3085_v50 }
  0xa9   :  { %738 = vmatprep.subr.bf16.mxu0 %v3089_v51  ;;  %779 = vmatprep.subr.bf16.mxu1 %v3093_v52 }
  0xaa   :  { %410 = vmatprep.mubr.bf16.mxu0 %v3795_v0  ;;  %483 = vmatprep.mubr.bf16.mxu1 %v3795_v0 }
  0xac   :  { %739 = vmatpush1.bf16.msra.mxu0 %v3095_v53  ;;  %780 = vmatpush1.bf16.msra.mxu1 %v3097_v54 }
  0xad   :  { %740 = vmatprep.subr.bf16.mxu0 %v3103_v57  ;;  %781 = vmatprep.subr.bf16.mxu1 %v3105_v58 }
  0xaf   :  { %411 = vmatmul.mubr.bf16.gmra.mrb[8].mxu0 %v142_v61  ;;  %484 = vmatmul.mubr.bf16.gmra.mrb[8].mxu1 %v142_v61 }
  0xb0   :  { %741 = vmatpush1.bf16.msra.mxu0 %v3109_v59  ;;  %782 = vmatpush1.bf16.msra.mxu1 %v3111_v60 }
  0xb1   :  { %742 = vmatprep.subr.bf16.mxu0 %v3113_v62  ;;  %783 = vmatprep.subr.bf16.mxu1 %v3115_v63 }
  0xb2   :  { %420 = vmatprep.mubr.bf16.mxu0 %v3795_v0  ;;  %493 = vmatprep.mubr.bf16.mxu1 %v3795_v0 }
  0xb4   :  { %743 = vmatpush1.bf16.msra.mxu0 %v3121_v1  ;;  %784 = vmatpush1.bf16.msra.mxu1 %v3123_v2 }
  0xb5   :  { %744 = vmatprep.subr.bf16.mxu0 %v3125_v5  ;;  %785 = vmatprep.subr.bf16.mxu1 %v3127_v6 }
  0xb7   :  { %421 = vmatmul.mubr.bf16.gmra.mrb[12].mxu0 %v143_v9  ;;  %494 = vmatmul.mubr.bf16.gmra.mrb[12].mxu1 %v143_v9 }
  0xb8   :  { %745 = vmatpush1.bf16.msra.mxu0 %v3135_v7  ;;  %786 = vmatpush1.bf16.msra.mxu1 %v3137_v8 }
  0xb9   :  { %746 = vmatprep.subr.bf16.mxu0 %v3139_v10  ;;  %787 = vmatprep.subr.bf16.mxu1 %v3141_v11 }
  0xba   :  { %764 = vmatprep.mubr.bf16.mxu0 %v3795_v0  ;;  %805 = vmatprep.mubr.bf16.mxu1 %v3795_v0 }
  0xbc   :  { %747 = vmatpush1.bf16.msra.mxu0 %v3147_v12  ;;  %788 = vmatpush1.bf16.msra.mxu1 %v3149_v13 }
  0xbd   :  { %847 = vmatprep.subr.bf16.mxu0 %v3055_v35  ;;  %888 = vmatprep.subr.bf16.mxu1 %v3057_v36 }
  0xbf   :  { %765 = vmatmul.mubr.bf16.vlgmr.msra.gmra.mrb[16].mxu0 %v3795_v0  ;;  %806 = vmatmul.mubr.bf16.vlgmr.msra.gmra.mrb[16].mxu1 %v3795_v0 }
  0xc0   :  { %848 = vmatpush1.bf16.msra.mxu0 %v3059_v38  ;;  %889 = vmatpush1.bf16.msra.mxu1 %v3061_v39 }
  0xc1   :  { %849 = vmatprep.subr.bf16.mxu0 %v3065_v40  ;;  %890 = vmatprep.subr.bf16.mxu1 %v3067_v41 }
  0xc2   :  { %879 = vmatprep.mubr.bf16.mxu0 %v3795_v0  ;;  %920 = vmatprep.mubr.bf16.mxu1 %v3795_v0 }
  0xc4   :  { %850 = vmatpush1.bf16.msra.mxu0 %v3069_v42  ;;  %891 = vmatpush1.bf16.msra.mxu1 %v3071_v43 }
  0xc5   :  { %851 = vmatprep.subr.bf16.mxu0 %v3075_v46  ;;  %892 = vmatprep.subr.bf16.mxu1 %v3079_v47 }
  0xc8   :  { %852 = vmatpush1.bf16.msra.mxu0 %v3083_v49  ;;  %893 = vmatpush1.bf16.msra.mxu1 %v3085_v50 }
  0xc9   :  { %853 = vmatprep.subr.bf16.mxu0 %v3089_v51  ;;  %894 = vmatprep.subr.bf16.mxu1 %v3093_v52 }
  0xcc   :  { %854 = vmatpush1.bf16.msra.mxu0 %v3095_v53  ;;  %895 = vmatpush1.bf16.msra.mxu1 %v3097_v54 }
  0xcd   :  { %855 = vmatprep.subr.bf16.mxu0 %v3103_v57  ;;  %896 = vmatprep.subr.bf16.mxu1 %v3105_v58 }
  0xd0   :  { %856 = vmatpush1.bf16.msra.mxu0 %v3109_v59  ;;  %897 = vmatpush1.bf16.msra.mxu1 %v3111_v60 }
  0xd1   :  { %857 = vmatprep.subr.bf16.mxu0 %v3113_v62  ;;  %898 = vmatprep.subr.bf16.mxu1 %v3115_v63 }
  0xd4   :  { %858 = vmatpush1.bf16.msra.mxu0 %v3121_v1  ;;  %899 = vmatpush1.bf16.msra.mxu1 %v3123_v2 }
  0xd5   :  { %859 = vmatprep.subr.bf16.mxu0 %v3125_v5  ;;  %900 = vmatprep.subr.bf16.mxu1 %v3127_v6 }
  0xd8   :  { %860 = vmatpush1.bf16.msra.mxu0 %v3135_v7  ;;  %901 = vmatpush1.bf16.msra.mxu1 %v3137_v8 }
  0xd9   :  { %861 = vmatprep.subr.bf16.mxu0 %v3139_v10  ;;  %902 = vmatprep.subr.bf16.mxu1 %v3141_v11 }
  0xdc   :  { %862 = vmatpush1.bf16.msra.mxu0 %v3147_v12  ;;  %903 = vmatpush1.bf16.msra.mxu1 %v3149_v13 }
  0xdd   :  { %962 = vmatprep.subr.bf16.mxu0 %v3055_v35  ;;  %1003 = vmatprep.subr.bf16.mxu1 %v3057_v36 }
 0x172   :  { %v3203_v22 = vpop.f32.mrb[0].mxu0  ;;  %v3205_v23 = vpop.f32.mrb[0].mxu1 }
 0x173   :  { %v394_v26 = vpop.f32.mrb[1].mxu0  ;;  %v467_v27 = vpop.f32.mrb[1].mxu1 }
 0x174   :  { %v396_v29 = vpop.f32.mrb[2].mxu0  ;;  %v469_v30 = vpop.f32.mrb[2].mxu1 }
 0x175   :  { %v3211_v31 = vadd.f32 %v396_v29, %v181_v25  ;;  %v398_v32 = vpop.f32.mrb[3].mxu0  ;;  %v3214_v33 = vadd.f32 %v469_v30, %v3201_v21  ;;  %v471_v34 = vpop.f32.mrb[3].mxu1 }
 0x176   :  { %v3216_v37 = vadd.f32 %v398_v32, %v185_v28  ;;  %v3219_v44 = vadd.f32 %v471_v34, %v3207_v24 }
 0x17a   :  { %v402_v45 = vpop.f32.mrb[4].mxu0  ;;  %v475_v48 = vpop.f32.mrb[4].mxu1 }
 0x17b   :  { %v3221_v55 = vadd.f32 %v402_v45, %v181_v25  ;;  %v404_v56 = vpop.f32.mrb[5].mxu0  ;;  %v3224_v61 = vadd.f32 %v475_v48, %v3201_v21  ;;  %v477_v3 = vpop.f32.mrb[5].mxu1 }
 0x17c   :  { %v3226_v4 = vadd.f32 %v404_v56, %v185_v28  ;;  %v406_v9 = vpop.f32.mrb[6].mxu0  ;;  %v3229_v14 = vadd.f32 %v477_v3, %v3207_v24  ;;  %v479_v15 = vpop.f32.mrb[6].mxu1 }
 0x17d   :  { %v3231_v16 = vadd.f32 %v406_v9, %v181_v25  ;;  %v408_v17 = vpop.f32.mrb[7].mxu0  ;;  %v3234_v19 = vadd.f32 %v479_v15, %v3201_v21  ;;  %v481_v29 = vpop.f32.mrb[7].mxu1 }
 0x17e   :  { %3803 = vst [vmem:[#allocation23_spill] sm:$0xff] %v3229_v14  ;;  %v3236_v30 = vadd.f32 %v408_v17, %v185_v28  ;;  %v3239_v32 = vadd.f32 %v481_v29, %v3207_v24 }
 0x17f   :  { %3804 = vst [vmem:[#allocation24_spill] sm:$0xff] %v3231_v16  ;;  %3805 = vst [vmem:[#allocation25_spill] sm:$0xff] %v3234_v19 }
 0x180   :  { %3806 = vst [vmem:[#allocation26_spill] sm:$0xff] %v3236_v30  ;;  %3807 = vst [vmem:[#allocation27_spill] sm:$0xff] %v3239_v32 }
 0x182   :  { %v412_v34 = vpop.f32.mrb[8].mxu0  ;;  %v485_v45 = vpop.f32.mrb[8].mxu1 }
 0x183   :  { %v3241_v48 = vadd.f32 %v412_v34, %v181_v25  ;;  %v414_v56 = vpop.f32.mrb[9].mxu0  ;;  %v3244_v3 = vadd.f32 %v485_v45, %v3201_v21  ;;  %v487_v9 = vpop.f32.mrb[9].mxu1 }
 0x184   :  { %v3246_v0 = vadd.f32 %v414_v56, %v185_v28  ;;  %v416_v20 = vpop.f32.mrb[10].mxu0  ;;  %v3249_v15 = vadd.f32 %v487_v9, %v3207_v24  ;;  %v489_v17 = vpop.f32.mrb[10].mxu1 }
 0x185   :  { %3808 = vst [vmem:[#allocation28_spill] sm:$0xff] %v3241_v48  ;;  %3809 = vst [vmem:[#allocation29_spill] sm:$0xff] %v3244_v3  ;;  %v3251_v18 = vadd.f32 %v416_v20, %v181_v25  ;;  %v418_v29 = vpop.f32.mrb[11].mxu0  ;;  %v3254_v32 = vadd.f32 %v489_v17, %v3201_v21  ;;  %v491_v34 = vpop.f32.mrb[11].mxu1 }
 0x186   :  { %3810 = vst [vmem:[#allocation30_spill] sm:$0xff] %v3246_v0  ;;  %3811 = vst [vmem:[#allocation31_spill] sm:$0xff] %v3249_v15  ;;  %v3256_v48 = vadd.f32 %v418_v29, %v185_v28  ;;  %v3259_v45 = vadd.f32 %v491_v34, %v3207_v24 }
 0x187   :  { %3812 = vst [vmem:[#allocation32_spill] sm:$0xff] %v3251_v18  ;;  %3813 = vst [vmem:[#allocation33_spill] sm:$0xff] %v3254_v32 }
 0x188   :  { %3814 = vst [vmem:[#allocation34_spill] sm:$0xff] %v3256_v48  ;;  %3815 = vst [vmem:[#allocation35_spill] sm:$0xff] %v3259_v45 }
 0x18a   :  { %v422_v3 = vpop.f32.mrb[12].mxu0  ;;  %v495_v56 = vpop.f32.mrb[12].mxu1 }
 0x18b   :  { %v3261_v0 = vadd.f32 %v422_v3, %v181_v25  ;;  %v424_v30 = vpop.f32.mrb[13].mxu0  ;;  %v3264_v9 = vadd.f32 %v495_v56, %v3201_v21  ;;  %v497_v20 = vpop.f32.mrb[13].mxu1 }
 0x18c   :  { %v3266_v18 = vadd.f32 %v424_v30, %v185_v28  ;;  %v426_v15 = vpop.f32.mrb[14].mxu0  ;;  %v3269_v17 = vadd.f32 %v497_v20, %v3207_v24  ;;  %v499_v29 = vpop.f32.mrb[14].mxu1  ;;  %v393_v30 = vadd.f32 %v3203_v22, %v181_v25  ;;  %v395_v20 = vadd.f32 %v394_v26, %v185_v28 }
 0x18d   :  { %3816 = vst [vmem:[#allocation36_spill] sm:$0xff] %v3261_v0  ;;  %3817 = vst [vmem:[#allocation37_spill] sm:$0xff] %v3264_v9  ;;  %v3271_v48 = vadd.f32 %v426_v15, %v181_v25  ;;  %v428_v34 = vpop.f32.mrb[15].mxu0  ;;  %v3274_v45 = vadd.f32 %v499_v29, %v3201_v21  ;;  %v501_v3 = vpop.f32.mrb[15].mxu1 }
 0x18e   :  { %3818 = vst [vmem:[#allocation38_spill] sm:$0xff] %v3266_v18  ;;  %3819 = vst [vmem:[#allocation39_spill] sm:$0xff] %v3269_v17  ;;  %v3276_v0 = vadd.f32 %v428_v34, %v185_v28  ;;  %v3279_v56 = vadd.f32 %v501_v3, %v3207_v24  ;;  %v466_v18 = vadd.f32 %v3205_v23, %v3201_v21 }
 0x18f   :  { %3820 = vst [vmem:[#allocation40_spill] sm:$0xff] %v3271_v48  ;;  %3821 = vst [vmem:[#allocation41_spill] sm:$0xff] %v3274_v45  ;;  %v468_v17 = vadd.f32 %v467_v27, %v3207_v24 }
 0x190   :  { %3822 = vst [vmem:[#allocation42_spill] sm:$0xff] %v3276_v0  ;;  %3823 = vst [vmem:[#allocation43_spill] sm:$0xff] %v3279_v56 }
 0x192   :  { %v766_v15 = vpop.f32.mrb[16].mxu0  ;;  %v807_v48 = vpop.f32.mrb[16].mxu1 }
 0x193   :  { %v814_v9 = vadd.f32 %v766_v15, %v393_v30  ;;  %v816_v32 = vadd.f32 %v807_v48, %v466_v18  ;;  %v768_v29 = vpop.f32.mrb[17].mxu0  ;;  %v809_v45 = vpop.f32.mrb[17].mxu1 }
 0x194   :  { %v815_v19 = vadd.f32 %v768_v29, %v395_v20  ;;  %v817_v34 = vadd.f32 %v809_v45, %v468_v17  ;;  %v770_v0 = vpop.f32.mrb[18].mxu0  ;;  %v811_v16 = vpop.f32.mrb[18].mxu1 }
 0x195   :  { %v2267_v3 = vmul.f32 -1.442695, %v814_v9  ;;  %v771_v56 = vpop.f32.mrb[19].mxu0  ;;  %v812_v14 = vpop.f32.mrb[19].mxu1 }
 0x196   :  { %v2268_v22 = vmul.f32 -1.442695, %v815_v19  ;;  %v2269_v21 = vmul.f32 -1.442695, %v817_v34 }
 0x197   :  { %2524 = vpow2.f32 %v2267_v3 }
 0x198   :  { %2526 = vpow2.f32 %v2268_v22 }
 0x199   :  { %2528 = vpow2.f32 %v2269_v21 }
 0x19a   :  { %2530 = vtanh.f32 %v816_v32  ;;  %v3824_v32 = vmov 0  }
 0x1a1   :  { %v2525_v23 = vpop.eup %2524 }
 0x1a2   :  { %v2527_v25 = vpop.eup %2526  ;;  %v821_v24 = vadd.f32 1.0, %v2525_v23 }
 0x1a3   :  { %v827_v26 = vadd.f32 1.0, %v2527_v25  ;;  %v2529_v18 = vpop.eup %2528 }
 0x1a4   :  { %2532 = vrcp.f32 %v821_v24  ;;  %v2531_v27 = vpop.eup %2530  ;;  %v834_v48 = vadd.f32 1.0, %v2529_v18 }
 0x1a5   :  { %2534 = vrcp.f32 %v827_v26 }
 0x1a6   :  { %2536 = vrcp.f32 %v834_v48 }
 0x1ae   :  { %v2533_v28 = vpop.eup %2532 }
 0x1af   :  { %v2535_v0 = vpop.eup %2534  ;;  %v838_v16 = vmul.f32 %v2533_v28, %v2531_v27 }
 0x1b0   :  { %v837_v45 = vmul.f32 0.0, %v2535_v0  ;;  %v2537_v19 = vpop.eup %2536 }
 0x1b2   :  { %v3285_v14 = vadd.f32 %v838_v16, %v837_v45 }
 0x1b4   :  { %2538 = vtanh.f32 %v3285_v14 }
 0x1be   :  { %v2539_v9 = vpop.eup %2538 }
 0x1bf   :  { %v841_v17 = vmul.f32 %v2539_v9, %v2537_v19 }
 0x1c1   :  { %v846_v56 = vpack.c.bf16 %v841_v17, %v841_v17 }
 0x1c3   :  { %880 = vmatmul.mubr.bf16.vlgmr.msra.gmra.mrb[20].mxu0 %v846_v56  ;;  %921 = vmatmul.mubr.bf16.vlgmr.msra.gmra.mrb[20].mxu1 %v846_v56 }
 0x1c4   :  { %963 = vmatpush1.bf16.msra.mxu0 %v3059_v38  ;;  %1004 = vmatpush1.bf16.msra.mxu1 %v3061_v39 }
 0x1c5   :  { %964 = vmatprep.subr.bf16.mxu0 %v3065_v40  ;;  %1005 = vmatprep.subr.bf16.mxu1 %v3067_v41 }
 0x1c6   :  { %994 = vmatprep.mubr.bf16.mxu0 %v3824_v32  ;;  %1035 = vmatprep.mubr.bf16.mxu1 %v3824_v32 }
 0x1c8   :  { %965 = vmatpush1.bf16.msra.mxu0 %v3069_v42  ;;  %1006 = vmatpush1.bf16.msra.mxu1 %v3071_v43 }
 0x1c9   :  { %966 = vmatprep.subr.bf16.mxu0 %v3075_v46  ;;  %1007 = vmatprep.subr.bf16.mxu1 %v3079_v47 }
 0x1cc   :  { %967 = vmatpush1.bf16.msra.mxu0 %v3083_v49  ;;  %1008 = vmatpush1.bf16.msra.mxu1 %v3085_v50 }
 0x1cd   :  { %968 = vmatprep.subr.bf16.mxu0 %v3089_v51  ;;  %1009 = vmatprep.subr.bf16.mxu1 %v3093_v52 }
 0x1d0   :  { %969 = vmatpush1.bf16.msra.mxu0 %v3095_v53  ;;  %1010 = vmatpush1.bf16.msra.mxu1 %v3097_v54 }
 0x1d1   :  { %970 = vmatprep.subr.bf16.mxu0 %v3103_v57  ;;  %1011 = vmatprep.subr.bf16.mxu1 %v3105_v58 }
 0x1d4   :  { %971 = vmatpush1.bf16.msra.mxu0 %v3109_v59  ;;  %1012 = vmatpush1.bf16.msra.mxu1 %v3111_v60 }
 0x1d5   :  { %972 = vmatprep.subr.bf16.mxu0 %v3113_v62  ;;  %1013 = vmatprep.subr.bf16.mxu1 %v3115_v63 }
 0x1d8   :  { %973 = vmatpush1.bf16.msra.mxu0 %v3121_v1  ;;  %1014 = vmatpush1.bf16.msra.mxu1 %v3123_v2 }
 0x1d9   :  { %974 = vmatprep.subr.bf16.mxu0 %v3125_v5  ;;  %1015 = vmatprep.subr.bf16.mxu1 %v3127_v6 }
 0x1dc   :  { %975 = vmatpush1.bf16.msra.mxu0 %v3135_v7  ;;  %1016 = vmatpush1.bf16.msra.mxu1 %v3137_v8 }
 0x1dd   :  { %976 = vmatprep.subr.bf16.mxu0 %v3139_v10  ;;  %1017 = vmatprep.subr.bf16.mxu1 %v3141_v11 }
 0x1e0   :  { %977 = vmatpush1.bf16.msra.mxu0 %v3147_v12  ;;  %1018 = vmatpush1.bf16.msra.mxu1 %v3149_v13 }
 0x1e1   :  { %1077 = vmatprep.subr.bf16.mxu0 %v3055_v35  ;;  %1118 = vmatprep.subr.bf16.mxu1 %v3057_v36 }
 0x296   :  { %v881_v30 = vpop.f32.mrb[20].mxu0  ;;  %v922_v20 = vpop.f32.mrb[20].mxu1 }
 0x297   :  { %v929_v15 = vadd.f32 %v881_v30, %v3211_v31  ;;  %v931_v29 = vadd.f32 %v922_v20, %v3214_v33  ;;  %v883_v34 = vpop.f32.mrb[21].mxu0  ;;  %v924_v3 = vpop.f32.mrb[21].mxu1 }
 0x298   :  { %v930_v22 = vadd.f32 %v883_v34, %v3216_v37  ;;  %v932_v21 = vadd.f32 %v924_v3, %v3219_v44  ;;  %v885_v23 = vpop.f32.mrb[22].mxu0  ;;  %v926_v25 = vpop.f32.mrb[22].mxu1 }
 0x299   :  { %v2270_v24 = vmul.f32 -1.442695, %v929_v15  ;;  %v886_v26 = vpop.f32.mrb[23].mxu0  ;;  %v927_v18 = vpop.f32.mrb[23].mxu1 }
 0x29a   :  { %v2271_v27 = vmul.f32 -1.442695, %v930_v22  ;;  %v2272_v28 = vmul.f32 -1.442695, %v932_v21 }
 0x29b   :  { %2540 = vpow2.f32 %v2270_v24  ;;  %v3825_v24 = vld [vmem:[#allocation23_spill] sm:$0xff] }
 0x29c   :  { %2542 = vpow2.f32 %v2271_v27 }
 0x29d   :  { %2544 = vpow2.f32 %v2272_v28 }
 0x29e   :  { %2546 = vtanh.f32 %v931_v29 }
 0x2a5   :  { %v2541_v0 = vpop.eup %2540 }
 0x2a6   :  { %v2543_v16 = vpop.eup %2542  ;;  %v936_v31 = vadd.f32 1.0, %v2541_v0 }
 0x2a7   :  { %v942_v33 = vadd.f32 1.0, %v2543_v16  ;;  %v2545_v37 = vpop.eup %2544 }
 0x2a8   :  { %2548 = vrcp.f32 %v936_v31  ;;  %v2547_v48 = vpop.eup %2546  ;;  %v949_v9 = vadd.f32 1.0, %v2545_v37 }
 0x2a9   :  { %2550 = vrcp.f32 %v942_v33 }
 0x2aa   :  { %2552 = vrcp.f32 %v949_v9 }
 0x2b2   :  { %v2549_v44 = vpop.eup %2548 }
 0x2b3   :  { %v2551_v45 = vpop.eup %2550  ;;  %v953_v19 = vmul.f32 %v2549_v44, %v2547_v48 }
 0x2b4   :  { %v952_v17 = vmul.f32 %v2551_v45, %v3285_v14  ;;  %v2553_v30 = vpop.eup %2552 }
 0x2b6   :  { %v3327_v56 = vadd.f32 %v953_v19, %v952_v17 }
 0x2b8   :  { %2554 = vtanh.f32 %v3327_v56 }
 0x2c2   :  { %v2555_v20 = vpop.eup %2554 }
 0x2c3   :  { %v956_v15 = vmul.f32 %v2555_v20, %v2553_v30 }
 0x2c5   :  { %v961_v29 = vpack.c.bf16 %v956_v15, %v956_v15 }
 0x2c7   :  { %995 = vmatmul.mubr.bf16.vlgmr.msra.gmra.mrb[24].mxu0 %v961_v29  ;;  %1036 = vmatmul.mubr.bf16.vlgmr.msra.gmra.mrb[24].mxu1 %v961_v29 }
 0x2c8   :  { %1078 = vmatpush1.bf16.msra.mxu0 %v3059_v38  ;;  %1119 = vmatpush1.bf16.msra.mxu1 %v3061_v39 }
 0x2c9   :  { %1079 = vmatprep.subr.bf16.mxu0 %v3065_v40  ;;  %1120 = vmatprep.subr.bf16.mxu1 %v3067_v41 }
 0x2ca   :  { %1109 = vmatprep.mubr.bf16.mxu0 %v3824_v32  ;;  %1150 = vmatprep.mubr.bf16.mxu1 %v3824_v32 }
 0x2cc   :  { %1080 = vmatpush1.bf16.msra.mxu0 %v3069_v42  ;;  %1121 = vmatpush1.bf16.msra.mxu1 %v3071_v43 }
 0x2cd   :  { %1081 = vmatprep.subr.bf16.mxu0 %v3075_v46  ;;  %1122 = vmatprep.subr.bf16.mxu1 %v3079_v47 }
 0x2d0   :  { %1082 = vmatpush1.bf16.msra.mxu0 %v3083_v49  ;;  %1123 = vmatpush1.bf16.msra.mxu1 %v3085_v50 }
 0x2d1   :  { %1083 = vmatprep.subr.bf16.mxu0 %v3089_v51  ;;  %1124 = vmatprep.subr.bf16.mxu1 %v3093_v52 }
 0x2d4   :  { %1084 = vmatpush1.bf16.msra.mxu0 %v3095_v53  ;;  %1125 = vmatpush1.bf16.msra.mxu1 %v3097_v54 }
 0x2d5   :  { %1085 = vmatprep.subr.bf16.mxu0 %v3103_v57  ;;  %1126 = vmatprep.subr.bf16.mxu1 %v3105_v58 }
 0x2d8   :  { %1086 = vmatpush1.bf16.msra.mxu0 %v3109_v59  ;;  %1127 = vmatpush1.bf16.msra.mxu1 %v3111_v60 }
 0x2d9   :  { %1087 = vmatprep.subr.bf16.mxu0 %v3113_v62  ;;  %1128 = vmatprep.subr.bf16.mxu1 %v3115_v63 }
 0x2dc   :  { %1088 = vmatpush1.bf16.msra.mxu0 %v3121_v1  ;;  %1129 = vmatpush1.bf16.msra.mxu1 %v3123_v2 }
 0x2dd   :  { %1089 = vmatprep.subr.bf16.mxu0 %v3125_v5  ;;  %1130 = vmatprep.subr.bf16.mxu1 %v3127_v6 }
 0x2e0   :  { %1090 = vmatpush1.bf16.msra.mxu0 %v3135_v7  ;;  %1131 = vmatpush1.bf16.msra.mxu1 %v3137_v8 }
 0x2e1   :  { %1091 = vmatprep.subr.bf16.mxu0 %v3139_v10  ;;  %1132 = vmatprep.subr.bf16.mxu1 %v3141_v11 }
 0x2e4   :  { %1092 = vmatpush1.bf16.msra.mxu0 %v3147_v12  ;;  %1133 = vmatpush1.bf16.msra.mxu1 %v3149_v13 }
 0x2e5   :  { %1192 = vmatprep.subr.bf16.mxu0 %v3055_v35  ;;  %1233 = vmatprep.subr.bf16.mxu1 %v3057_v36 }
 0x39a   :  { %v996_v14 = vpop.f32.mrb[24].mxu0  ;;  %v1037_v34 = vpop.f32.mrb[24].mxu1 }
 0x39b   :  { %v1044_v3 = vadd.f32 %v996_v14, %v3221_v55  ;;  %v1046_v22 = vadd.f32 %v1037_v34, %v3224_v61  ;;  %v998_v21 = vpop.f32.mrb[25].mxu0  ;;  %v1039_v23 = vpop.f32.mrb[25].mxu1 }
 0x39c   :  { %v1045_v25 = vadd.f32 %v998_v21, %v3226_v4  ;;  %v1047_v26 = vadd.f32 %v1039_v23, %v3825_v24  ;;  %v1000_v18 = vpop.f32.mrb[26].mxu0  ;;  %v1041_v27 = vpop.f32.mrb[26].mxu1 }
 0x39d   :  { %v2273_v28 = vmul.f32 -1.442695, %v1044_v3  ;;  %v1001_v0 = vpop.f32.mrb[27].mxu0  ;;  %v1042_v16 = vpop.f32.mrb[27].mxu1 }
 0x39e   :  { %v2274_v35 = vmul.f32 -1.442695, %v1045_v25  ;;  %v2275_v31 = vmul.f32 -1.442695, %v1047_v26 }
 0x39f   :  { %2556 = vpow2.f32 %v2273_v28 }
 0x3a0   :  { %2558 = vpow2.f32 %v2274_v35 }
 0x3a1   :  { %2560 = vpow2.f32 %v2275_v31 }
 0x3a2   :  { %2562 = vtanh.f32 %v1046_v22 }
 0x3a9   :  { %v2557_v33 = vpop.eup %2556 }
 0x3aa   :  { %v2559_v37 = vpop.eup %2558  ;;  %v1051_v55 = vadd.f32 1.0, %v2557_v33 }
 0x3ab   :  { %v1057_v61 = vadd.f32 1.0, %v2559_v37  ;;  %v2561_v4 = vpop.eup %2560 }
 0x3ac   :  { %2564 = vrcp.f32 %v1051_v55  ;;  %v2563_v48 = vpop.eup %2562  ;;  %v1064_v9 = vadd.f32 1.0, %v2561_v4 }
 0x3ad   :  { %2566 = vrcp.f32 %v1057_v61 }
 0x3ae   :  { %2568 = vrcp.f32 %v1064_v9  ;;  %v3430_v9 = vld [vmem:[#allocation9 + $0x20] ss:$16 sps:$4 sm:$0xff]  }
 0x3b6   :  { %v2565_v44 = vpop.eup %2564 }
 0x3b7   :  { %v2567_v45 = vpop.eup %2566  ;;  %v1068_v19 = vmul.f32 %v2565_v44, %v2563_v48  ;;  %v3416_v48 = vld [vmem:[#allocation9] ss:$16 sps:$4 sm:$0xff]   ;;  %v3419_v44 = vld [vmem:[#allocation9 + $0x8] ss:$16 sps:$4 sm:$0xff]  }
 0x3b8   :  { %v1067_v17 = vmul.f32 %v2567_v45, %v3327_v56  ;;  %v2569_v20 = vpop.eup %2568  ;;  %v3422_v45 = vld [vmem:[#allocation9 + $0x24] ss:$16 sps:$4 sm:$0xff]  }
 0x3ba   :  { %v3369_v30 = vadd.f32 %v1068_v19, %v1067_v17  ;;  %v3425_v19 = vld [vmem:[#allocation9 + $0x2c] ss:$16 sps:$4 sm:$0xff]   ;;  %v3433_v17 = vld [vmem:[#allocation9 + $0x28] ss:$16 sps:$4 sm:$0xff]  }
 0x3bc   :  { %2570 = vtanh.f32 %v3369_v30 }
 0x3c6   :  { %v2571_v15 = vpop.eup %2570 }
 0x3c7   :  { %v1071_v29 = vmul.f32 %v2571_v15, %v2569_v20  ;;  %v3439_v20 = vld [vmem:[#allocation9 + $0x4c] ss:$16 sps:$4 sm:$0xff]   ;;  %v3442_v15 = vld [vmem:[#allocation9 + $0x40] ss:$16 sps:$4 sm:$0xff]  }
 0x3c9   :  { %v1076_v14 = vpack.c.bf16 %v1071_v29, %v1071_v29  ;;  %v3445_v29 = vld [vmem:[#allocation9 + $0x48] ss:$16 sps:$4 sm:$0xff]  }
 0x3cb   :  { %1110 = vmatmul.mubr.bf16.vlgmr.msra.gmra.mrb[28].mxu0 %v1076_v14  ;;  %1151 = vmatmul.mubr.bf16.vlgmr.msra.gmra.mrb[28].mxu1 %v1076_v14  ;;  %v3448_v14 = vld [vmem:[#allocation9 + $0x64] ss:$16 sps:$4 sm:$0xff]  }
 0x3cc   :  { %1193 = vmatpush1.bf16.msra.mxu0 %v3059_v38  ;;  %1234 = vmatpush1.bf16.msra.mxu1 %v3061_v39  ;;  %v3404_v38 = vld [vmem:[#allocation9 + $0x4] ss:$16 sps:$4 sm:$0xff]  }
 0x3cd   :  { %1194 = vmatprep.subr.bf16.mxu0 %v3065_v40  ;;  %1235 = vmatprep.subr.bf16.mxu1 %v3067_v41  ;;  %v3826_v41 = vld [vmem:[#allocation24_spill] sm:$0xff] }
 0x3ce   :  { %1224 = vmatprep.mubr.bf16.mxu0 %v3824_v32  ;;  %1265 = vmatprep.mubr.bf16.mxu1 %v3824_v32 }
 0x3d0   :  { %1195 = vmatpush1.bf16.msra.mxu0 %v3069_v42  ;;  %1236 = vmatpush1.bf16.msra.mxu1 %v3071_v43  ;;  %v3827_v43 = vld [vmem:[#allocation25_spill] sm:$0xff] }
 0x3d1   :  { %1196 = vmatprep.subr.bf16.mxu0 %v3075_v46  ;;  %1237 = vmatprep.subr.bf16.mxu1 %v3079_v47 }
 0x3d4   :  { %1197 = vmatpush1.bf16.msra.mxu0 %v3083_v49  ;;  %1238 = vmatpush1.bf16.msra.mxu1 %v3085_v50  ;;  %v3828_v50 = vld [vmem:[#allocation26_spill] sm:$0xff] }
 0x3d5   :  { %1198 = vmatprep.subr.bf16.mxu0 %v3089_v51  ;;  %1239 = vmatprep.subr.bf16.mxu1 %v3093_v52  ;;  %v3829_v52 = vld [vmem:[#allocation27_spill] sm:$0xff] }
 0x3d8   :  { %1199 = vmatpush1.bf16.msra.mxu0 %v3095_v53  ;;  %1240 = vmatpush1.bf16.msra.mxu1 %v3097_v54 }
 0x3d9   :  { %1200 = vmatprep.subr.bf16.mxu0 %v3103_v57  ;;  %1241 = vmatprep.subr.bf16.mxu1 %v3105_v58 }
 0x3dc   :  { %1201 = vmatpush1.bf16.msra.mxu0 %v3109_v59  ;;  %1242 = vmatpush1.bf16.msra.mxu1 %v3111_v60 }
 0x3dd   :  { %1202 = vmatprep.subr.bf16.mxu0 %v3113_v62  ;;  %1243 = vmatprep.subr.bf16.mxu1 %v3115_v63 }
 0x3e0   :  { %1203 = vmatpush1.bf16.msra.mxu0 %v3121_v1  ;;  %1244 = vmatpush1.bf16.msra.mxu1 %v3123_v2 }
 0x3e1   :  { %1204 = vmatprep.subr.bf16.mxu0 %v3125_v5  ;;  %1245 = vmatprep.subr.bf16.mxu1 %v3127_v6 }
 0x3e4   :  { %1205 = vmatpush1.bf16.msra.mxu0 %v3135_v7  ;;  %1246 = vmatpush1.bf16.msra.mxu1 %v3137_v8 }
 0x3e5   :  { %1206 = vmatprep.subr.bf16.mxu0 %v3139_v10  ;;  %1247 = vmatprep.subr.bf16.mxu1 %v3141_v11 }
 0x3e8   :  { %1207 = vmatpush1.bf16.msra.mxu0 %v3147_v12  ;;  %1248 = vmatpush1.bf16.msra.mxu1 %v3149_v13 }
 0x3e9   :  { %1307 = vmatprep.subr.bf16.mxu0 %v3404_v38  ;;  %1348 = vmatprep.subr.bf16.mxu1 %v3057_v36 }
 0x49e   :  { %v1111_v39 = vpop.f32.mrb[28].mxu0  ;;  %v1152_v40 = vpop.f32.mrb[28].mxu1 }
 0x49f   :  { %v1159_v42 = vadd.f32 %v1111_v39, %v3826_v41  ;;  %v1161_v46 = vadd.f32 %v1152_v40, %v3827_v43  ;;  %v1113_v47 = vpop.f32.mrb[29].mxu0  ;;  %v1154_v49 = vpop.f32.mrb[29].mxu1  ;;  %v3451_v39 = vld [vmem:[#allocation9 + $0x6c] ss:$16 sps:$4 sm:$0xff]   ;;  %v3454_v40 = vld [vmem:[#allocation9 + $0x60] ss:$16 sps:$4 sm:$0xff]  }
 0x4a0   :  { %v1160_v51 = vadd.f32 %v1113_v47, %v3828_v50  ;;  %v1162_v53 = vadd.f32 %v1154_v49, %v3829_v52  ;;  %v1115_v54 = vpop.f32.mrb[30].mxu0  ;;  %v1156_v56 = vpop.f32.mrb[30].mxu1  ;;  %v3457_v41 = vld [vmem:[#allocation9 + $0x68] ss:$16 sps:$4 sm:$0xff]  }
 0x4a1   :  { %v2276_v34 = vmul.f32 -1.442695, %v1159_v42  ;;  %v1116_v3 = vpop.f32.mrb[31].mxu0  ;;  %v1157_v22 = vpop.f32.mrb[31].mxu1 }
 0x4a2   :  { %v2277_v21 = vmul.f32 -1.442695, %v1160_v51  ;;  %v2278_v36 = vmul.f32 -1.442695, %v1162_v53 }
 0x4a3   :  { %2572 = vpow2.f32 %v2276_v34 }
 0x4a4   :  { %2574 = vpow2.f32 %v2277_v21 }
 0x4a5   :  { %2576 = vpow2.f32 %v2278_v36 }
 0x4a6   :  { %2578 = vtanh.f32 %v1161_v46 }
 0x4ad   :  { %v2573_v23 = vpop.eup %2572 }
 0x4ae   :  { %v2575_v25 = vpop.eup %2574  ;;  %v1166_v24 = vadd.f32 1.0, %v2573_v23 }
 0x4af   :  { %v1172_v26 = vadd.f32 1.0, %v2575_v25  ;;  %v2577_v18 = vpop.eup %2576 }
 0x4b0   :  { %2580 = vrcp.f32 %v1166_v24  ;;  %v2579_v27 = vpop.eup %2578  ;;  %v1179_v35 = vadd.f32 1.0, %v2577_v18  ;;  %v3504_v18 = vld [vmem:[#allocation9 + $0x84] ss:$16 sps:$4 sm:$0xff]  }
 0x4b1   :  { %2582 = vrcp.f32 %v1172_v26 }
 0x4b2   :  { %2584 = vrcp.f32 %v1179_v35  ;;  %v3519_v35 = vld [vmem:[#allocation9 + $0xac] ss:$16 sps:$4 sm:$0xff]  }
 0x4ba   :  { %v2581_v28 = vpop.eup %2580 }
 0x4bb   :  { %v2583_v0 = vpop.eup %2582  ;;  %v1183_v16 = vmul.f32 %v2581_v28, %v2579_v27  ;;  %v3507_v27 = vld [vmem:[#allocation9 + $0x8c] ss:$16 sps:$4 sm:$0xff]   ;;  %v3510_v28 = vld [vmem:[#allocation9 + $0x80] ss:$16 sps:$4 sm:$0xff]  }
 0x4bc   :  { %v1182_v31 = vmul.f32 %v2583_v0, %v3369_v30  ;;  %v2585_v37 = vpop.eup %2584  ;;  %v3436_v30 = vld [vmem:[#allocation9 + $0x44] ss:$16 sps:$4 sm:$0xff]   ;;  %v3513_v0 = vld [vmem:[#allocation9 + $0x88] ss:$16 sps:$4 sm:$0xff]  }
 0x4be   :  { %v3413_v33 = vadd.f32 %v1183_v16, %v1182_v31  ;;  %v3516_v16 = vld [vmem:[#allocation9 + $0xa4] ss:$16 sps:$4 sm:$0xff]   ;;  %v3522_v31 = vld [vmem:[#allocation9 + $0xa0] ss:$16 sps:$4 sm:$0xff]  }
 0x4c0   :  { %2586 = vtanh.f32 %v3413_v33 }
 0x4ca   :  { %v2587_v55 = vpop.eup %2586 }
 0x4cb   :  { %v1186_v61 = vmul.f32 %v2587_v55, %v2585_v37  ;;  %v3528_v37 = vld [vmem:[#allocation9 + $0xc4] ss:$16 sps:$4 sm:$0xff]   ;;  %v3531_v55 = vld [vmem:[#allocation9 + $0xcc] ss:$16 sps:$4 sm:$0xff]  }
 0x4cd   :  { %v1191_v4 = vpack.c.bf16 %v1186_v61, %v1186_v61  ;;  %v3534_v61 = vld [vmem:[#allocation9 + $0xc0] ss:$16 sps:$4 sm:$0xff]  }
 0x4cf   :  { %1225 = vmatmul.mubr.bf16.vlgmr.msra.gmra.mrb[32].mxu0 %v1191_v4  ;;  %1266 = vmatmul.mubr.bf16.vlgmr.msra.gmra.mrb[32].mxu1 %v1191_v4  ;;  %v3537_v4 = vld [vmem:[#allocation9 + $0xc8] ss:$16 sps:$4 sm:$0xff]  }
 0x4d0   :  { %1308 = vmatpush1.bf16.msra.mxu0 %v3416_v48  ;;  %1349 = vmatpush1.bf16.msra.mxu1 %v3419_v44 }
 0x4d1   :  { %1309 = vmatprep.subr.bf16.mxu0 %v3422_v45  ;;  %1350 = vmatprep.subr.bf16.mxu1 %v3425_v19 }
 0x4d2   :  { %1339 = vmatprep.mubr.bf16.mxu0 %v3824_v32  ;;  %1380 = vmatprep.mubr.bf16.mxu1 %v3824_v32 }
 0x4d4   :  { %1310 = vmatpush1.bf16.msra.mxu0 %v3430_v9  ;;  %1351 = vmatpush1.bf16.msra.mxu1 %v3433_v17 }
 0x4d5   :  { %1311 = vmatprep.subr.bf16.mxu0 %v3436_v30  ;;  %1352 = vmatprep.subr.bf16.mxu1 %v3439_v20 }
 0x4d8   :  { %1312 = vmatpush1.bf16.msra.mxu0 %v3442_v15  ;;  %1353 = vmatpush1.bf16.msra.mxu1 %v3445_v29 }
 0x4d9   :  { %1313 = vmatprep.subr.bf16.mxu0 %v3448_v14  ;;  %1354 = vmatprep.subr.bf16.mxu1 %v3451_v39 }
 0x4dc   :  { %1314 = vmatpush1.bf16.msra.mxu0 %v3454_v40  ;;  %1355 = vmatpush1.bf16.msra.mxu1 %v3457_v41 }
 0x4dd   :  { %1315 = vmatprep.subr.bf16.mxu0 %v3103_v57  ;;  %1356 = vmatprep.subr.bf16.mxu1 %v3105_v58  ;;  %v3477_v57 = vld [vmem:[#allocation9 + $0xc] ss:$16 sps:$4 sm:$0xff]  }
 0x4e0   :  { %1316 = vmatpush1.bf16.msra.mxu0 %v3109_v59  ;;  %1357 = vmatpush1.bf16.msra.mxu1 %v3111_v60  ;;  %v3830_v60 = vld [vmem:[#allocation28_spill] sm:$0xff] }
 0x4e1   :  { %1317 = vmatprep.subr.bf16.mxu0 %v3113_v62  ;;  %1358 = vmatprep.subr.bf16.mxu1 %v3115_v63  ;;  %v3831_v63 = vld [vmem:[#allocation29_spill] sm:$0xff] }
 0x4e4   :  { %1318 = vmatpush1.bf16.msra.mxu0 %v3121_v1  ;;  %1359 = vmatpush1.bf16.msra.mxu1 %v3123_v2 }
 0x4e5   :  { %1319 = vmatprep.subr.bf16.mxu0 %v3125_v5  ;;  %1360 = vmatprep.subr.bf16.mxu1 %v3127_v6  ;;  %v3832_v6 = vld [vmem:[#allocation30_spill] sm:$0xff] }
 0x4e8   :  { %1320 = vmatpush1.bf16.msra.mxu0 %v3135_v7  ;;  %1361 = vmatpush1.bf16.msra.mxu1 %v3137_v8  ;;  %v3833_v8 = vld [vmem:[#allocation31_spill] sm:$0xff] }
 0x4e9   :  { %1321 = vmatprep.subr.bf16.mxu0 %v3139_v10  ;;  %1362 = vmatprep.subr.bf16.mxu1 %v3141_v11 }
 0x4ec   :  { %1322 = vmatpush1.bf16.msra.mxu0 %v3147_v12  ;;  %1363 = vmatpush1.bf16.msra.mxu1 %v3149_v13 }
 0x4ed   :  { %1422 = vmatprep.subr.bf16.mxu0 %v3404_v38  ;;  %1463 = vmatprep.subr.bf16.mxu1 %v3477_v57 }
 0x5a2   :  { %v1226_v58 = vpop.f32.mrb[32].mxu0  ;;  %v1267_v59 = vpop.f32.mrb[32].mxu1 }
 0x5a3   :  { %v1274_v62 = vadd.f32 %v1226_v58, %v3830_v60  ;;  %v1276_v1 = vadd.f32 %v1267_v59, %v3831_v63  ;;  %v1228_v2 = vpop.f32.mrb[33].mxu0  ;;  %v1269_v5 = vpop.f32.mrb[33].mxu1  ;;  %v3540_v58 = vld [vmem:[#allocation9 + $0xe4] ss:$16 sps:$4 sm:$0xff]   ;;  %v3543_v59 = vld [vmem:[#allocation9 + $0xec] ss:$16 sps:$4 sm:$0xff]  }
 0x5a4   :  { %v1275_v7 = vadd.f32 %v1228_v2, %v3832_v6  ;;  %v1277_v10 = vadd.f32 %v1269_v5, %v3833_v8  ;;  %v1230_v11 = vpop.f32.mrb[34].mxu0  ;;  %v1271_v12 = vpop.f32.mrb[34].mxu1  ;;  %v3546_v60 = vld [vmem:[#allocation9 + $0xe0] ss:$16 sps:$4 sm:$0xff]   ;;  %v3834_v2 = vld [vmem:[#allocation32_spill] sm:$0xff] }
 0x5a5   :  { %v2279_v13 = vmul.f32 -1.442695, %v1274_v62  ;;  %v1231_v42 = vpop.f32.mrb[35].mxu0  ;;  %v1272_v43 = vpop.f32.mrb[35].mxu1  ;;  %v3549_v62 = vld [vmem:[#allocation9 + $0xe8] ss:$16 sps:$4 sm:$0xff]  }
 0x5a6   :  { %v2280_v46 = vmul.f32 -1.442695, %v1275_v7  ;;  %v2281_v47 = vmul.f32 -1.442695, %v1277_v10  ;;  %v3835_v6 = vld [vmem:[#allocation33_spill] sm:$0xff]  ;;  %v3836_v11 = vld [vmem:[#allocation34_spill] sm:$0xff] }
 0x5a7   :  { %2588 = vpow2.f32 %v2279_v13  ;;  %v3837_v13 = vld [vmem:[#allocation35_spill] sm:$0xff] }
 0x5a8   :  { %2590 = vpow2.f32 %v2280_v46 }
 0x5a9   :  { %2592 = vpow2.f32 %v2281_v47 }
 0x5aa   :  { %2594 = vtanh.f32 %v1276_v1 }
 0x5b1   :  { %v2589_v49 = vpop.eup %2588 }
 0x5b2   :  { %v2591_v50 = vpop.eup %2590  ;;  %v1281_v51 = vadd.f32 1.0, %v2589_v49 }
 0x5b3   :  { %v1287_v52 = vadd.f32 1.0, %v2591_v50  ;;  %v2593_v53 = vpop.eup %2592 }
 0x5b4   :  { %2596 = vrcp.f32 %v1281_v51  ;;  %v2595_v54 = vpop.eup %2594  ;;  %v1294_v22 = vadd.f32 1.0, %v2593_v53 }
 0x5b5   :  { %2598 = vrcp.f32 %v1287_v52 }
 0x5b6   :  { %2600 = vrcp.f32 %v1294_v22 }
 0x5be   :  { %v2597_v56 = vpop.eup %2596 }
 0x5bf   :  { %v2599_v34 = vpop.eup %2598  ;;  %v1298_v3 = vmul.f32 %v2597_v56, %v2595_v54 }
 0x5c0   :  { %v1297_v21 = vmul.f32 %v2599_v34, %v3413_v33  ;;  %v2601_v23 = vpop.eup %2600  ;;  %v3525_v33 = vld [vmem:[#allocation9 + $0xa8] ss:$16 sps:$4 sm:$0xff]  }
 0x5c2   :  { %v3485_v36 = vadd.f32 %v1298_v3, %v1297_v21 }
 0x5c4   :  { %2602 = vtanh.f32 %v3485_v36 }
 0x5ce   :  { %v2603_v25 = vpop.eup %2602 }
 0x5cf   :  { %v1301_v24 = vmul.f32 %v2603_v25, %v2601_v23 }
 0x5d1   :  { %v1306_v26 = vpack.c.bf16 %v1301_v24, %v1301_v24 }
 0x5d3   :  { %1340 = vmatmul.mubr.bf16.vlgmr.msra.gmra.mrb[36].mxu0 %v1306_v26  ;;  %1381 = vmatmul.mubr.bf16.vlgmr.msra.gmra.mrb[36].mxu1 %v1306_v26 }
 0x5d4   :  { %1423 = vmatpush1.bf16.msra.mxu0 %v3416_v48  ;;  %1464 = vmatpush1.bf16.msra.mxu1 %v3419_v44 }
 0x5d5   :  { %1424 = vmatprep.subr.bf16.mxu0 %v3422_v45  ;;  %1465 = vmatprep.subr.bf16.mxu1 %v3425_v19 }
 0x5d6   :  { %1454 = vmatprep.mubr.bf16.mxu0 %v3824_v32  ;;  %1495 = vmatprep.mubr.bf16.mxu1 %v3824_v32 }
 0x5d8   :  { %1425 = vmatpush1.bf16.msra.mxu0 %v3430_v9  ;;  %1466 = vmatpush1.bf16.msra.mxu1 %v3433_v17 }
 0x5d9   :  { %1426 = vmatprep.subr.bf16.mxu0 %v3436_v30  ;;  %1467 = vmatprep.subr.bf16.mxu1 %v3439_v20 }
 0x5dc   :  { %1427 = vmatpush1.bf16.msra.mxu0 %v3442_v15  ;;  %1468 = vmatpush1.bf16.msra.mxu1 %v3445_v29 }
 0x5dd   :  { %1428 = vmatprep.subr.bf16.mxu0 %v3448_v14  ;;  %1469 = vmatprep.subr.bf16.mxu1 %v3451_v39 }
 0x5e0   :  { %1429 = vmatpush1.bf16.msra.mxu0 %v3454_v40  ;;  %1470 = vmatpush1.bf16.msra.mxu1 %v3457_v41 }
 0x5e1   :  { %1430 = vmatprep.subr.bf16.mxu0 %v3504_v18  ;;  %1471 = vmatprep.subr.bf16.mxu1 %v3507_v27 }
 0x5e4   :  { %1431 = vmatpush1.bf16.msra.mxu0 %v3510_v28  ;;  %1472 = vmatpush1.bf16.msra.mxu1 %v3513_v0 }
 0x5e5   :  { %1432 = vmatprep.subr.bf16.mxu0 %v3516_v16  ;;  %1473 = vmatprep.subr.bf16.mxu1 %v3519_v35 }
 0x5e8   :  { %1433 = vmatpush1.bf16.msra.mxu0 %v3522_v31  ;;  %1474 = vmatpush1.bf16.msra.mxu1 %v3525_v33 }
 0x5e9   :  { %1434 = vmatprep.subr.bf16.mxu0 %v3528_v37  ;;  %1475 = vmatprep.subr.bf16.mxu1 %v3531_v55 }
 0x5ec   :  { %1435 = vmatpush1.bf16.msra.mxu0 %v3534_v61  ;;  %1476 = vmatpush1.bf16.msra.mxu1 %v3537_v4 }
 0x5ed   :  { %1436 = vmatprep.subr.bf16.mxu0 %v3540_v58  ;;  %1477 = vmatprep.subr.bf16.mxu1 %v3543_v59 }
 0x5f0   :  { %1437 = vmatpush1.bf16.msra.mxu0 %v3546_v60  ;;  %1478 = vmatpush1.bf16.msra.mxu1 %v3549_v62 }
 0x5f1   :  { %1537 = vmatprep.subr.bf16.mxu0 %v3404_v38  ;;  %1578 = vmatprep.subr.bf16.mxu1 %v3477_v57 }
 0x6a6   :  { %v1341_v63 = vpop.f32.mrb[36].mxu0  ;;  %v1382_v1 = vpop.f32.mrb[36].mxu1 }
 0x6a7   :  { %v1389_v5 = vadd.f32 %v1341_v63, %v3834_v2  ;;  %v1391_v7 = vadd.f32 %v1382_v1, %v3835_v6  ;;  %v1343_v8 = vpop.f32.mrb[37].mxu0  ;;  %v1384_v10 = vpop.f32.mrb[37].mxu1 }
 0x6a8   :  { %v1390_v12 = vadd.f32 %v1343_v8, %v3836_v11  ;;  %v1392_v42 = vadd.f32 %v1384_v10, %v3837_v13  ;;  %v1345_v43 = vpop.f32.mrb[38].mxu0  ;;  %v1386_v46 = vpop.f32.mrb[38].mxu1  ;;  %v2456_v10 = vld [vmem:[%s3787_s5 + $0x4] ss:$8 sps:$4 sm:$0xff]   ;;  %v2454_v11 = vld [vmem:[%s3787_s5] ss:$8 sps:$4 sm:$0xff]  }
 0x6a9   :  { %v2282_v47 = vmul.f32 -1.442695, %v1389_v5  ;;  %v1346_v49 = vpop.f32.mrb[39].mxu0  ;;  %v1387_v50 = vpop.f32.mrb[39].mxu1  ;;  %v2457_v13 = vld [vmem:[%s3787_s5 + $0x10] ss:$8 sps:$4 sm:$0xff]  }
 0x6aa   :  { %v2283_v38 = vmul.f32 -1.442695, %v1390_v12  ;;  %v2284_v57 = vmul.f32 -1.442695, %v1392_v42  ;;  %v2459_v12 = vld [vmem:[%s3787_s5 + $0x14] ss:$8 sps:$4 sm:$0xff]  }
 0x6ab   :  { %2604 = vpow2.f32 %v2282_v47  ;;  %v2462_v42 = vld [vmem:[%s3787_s5 + $0x24] ss:$8 sps:$4 sm:$0xff]   ;;  %v2460_v43 = vld [vmem:[%s3787_s5 + $0x20] ss:$8 sps:$4 sm:$0xff]   ;;  %v2465_v46 = vld [vmem:[%s3787_s5 + $0x34] ss:$8 sps:$4 sm:$0xff]  }
 0x6ac   :  { %2606 = vpow2.f32 %v2283_v38  ;;  %v2463_v47 = vld [vmem:[%s3787_s5 + $0x30] ss:$8 sps:$4 sm:$0xff]   ;;  %v2468_v49 = vld [vmem:[%s3787_s5 + $0x44] ss:$8 sps:$4 sm:$0xff]   ;;  %v2466_v50 = vld [vmem:[%s3787_s5 + $0x40] ss:$8 sps:$4 sm:$0xff]  }
 0x6ad   :  { %2608 = vpow2.f32 %v2284_v57  ;;  %v2471_v38 = vld [vmem:[%s3787_s5 + $0x54] ss:$8 sps:$4 sm:$0xff]  }
 0x6ae   :  { %2610 = vtanh.f32 %v1391_v7  ;;  %v2472_v57 = vld [vmem:[#allocation12] ss:$8 sps:$4 sm:$0xff]  }
 0x6b5   :  { %v2605_v51 = vpop.eup %2604 }
 0x6b6   :  { %v2607_v52 = vpop.eup %2606  ;;  %v1396_v53 = vadd.f32 1.0, %v2605_v51  ;;  %v2469_v51 = vld [vmem:[%s3787_s5 + $0x50] ss:$8 sps:$4 sm:$0xff]  }
 0x6b7   :  { %v1402_v54 = vadd.f32 1.0, %v2607_v52  ;;  %v2609_v56 = vpop.eup %2608  ;;  %v2474_v52 = vld [vmem:[#allocation12 + $0x4] ss:$8 sps:$4 sm:$0xff]  }
 0x6b8   :  { %2612 = vrcp.f32 %v1396_v53  ;;  %v2611_v34 = vpop.eup %2610  ;;  %v1409_v23 = vadd.f32 1.0, %v2609_v56  ;;  %v2477_v53 = vld [vmem:[%s3787_s5 + $0x64] ss:$8 sps:$4 sm:$0xff]  }
 0x6b9   :  { %2614 = vrcp.f32 %v1402_v54  ;;  %v2480_v54 = vld [vmem:[#allocation12 + $0x14] ss:$8 sps:$4 sm:$0xff]   ;;  %v2478_v56 = vld [vmem:[#allocation12 + $0x10] ss:$8 sps:$4 sm:$0xff]  }
 0x6ba   :  { %2616 = vrcp.f32 %v1409_v23  ;;  %v2481_v23 = vld [vmem:[%s3787_s5 + $0x70] ss:$8 sps:$4 sm:$0xff]  }
 0x6c2   :  { %v2613_v3 = vpop.eup %2612 }
 0x6c3   :  { %v2615_v22 = vpop.eup %2614  ;;  %v1413_v21 = vmul.f32 %v2613_v3, %v2611_v34  ;;  %v1647_v34 = vld [vmem:[#allocation6] sm:$0xff] }
 0x6c4   :  { %v1412_v25 = vmul.f32 %v2615_v22, %v3485_v36  ;;  %v2617_v26 = vpop.eup %2616  ;;  %v2475_v3 = vld [vmem:[%s3787_s5 + $0x60] ss:$8 sps:$4 sm:$0xff]   ;;  %v2483_v22 = vld [vmem:[%s3787_s5 + $0x74] ss:$8 sps:$4 sm:$0xff]  }
 0x6c6   :  { %v3559_v24 = vadd.f32 %v1413_v21, %v1412_v25  ;;  %v1648_v21 = vpack.c.bf16 %v1647_v34, %v1647_v34  ;;  %v2484_v25 = vld [vmem:[%s3790_s8] ss:$8 sps:$4 sm:$0xff]   ;;  %v2511_v34 = vld [vmem:[%s3790_s8 + $0x90] ss:$8 sps:$4 sm:$0xff]  }
 0x6c8   :  { %2618 = vtanh.f32 %v3559_v24 }
 0x6d2   :  { %v2619_v63 = vpop.eup %2618 }
 0x6d3   :  { %v1416_v1 = vmul.f32 %v2619_v63, %v2617_v26  ;;  %v2489_v26 = vld [vmem:[%s3790_s8 + $0x14] ss:$8 sps:$4 sm:$0xff]   ;;  %v2487_v63 = vld [vmem:[%s3790_s8 + $0x10] ss:$8 sps:$4 sm:$0xff]  }
 0x6d5   :  { %v1421_v2 = vpack.c.bf16 %v1416_v1, %v1416_v1  ;;  %v2492_v1 = vld [vmem:[%s3790_s8 + $0x24] ss:$8 sps:$4 sm:$0xff]  }
 0x6d7   :  { %1455 = vmatmul.mubr.bf16.vlgmr.msra.gmra.mrb[40].mxu0 %v1421_v2  ;;  %1496 = vmatmul.mubr.bf16.vlgmr.msra.gmra.mrb[40].mxu1 %v1421_v2  ;;  %v2490_v2 = vld [vmem:[%s3790_s8 + $0x20] ss:$8 sps:$4 sm:$0xff]  }
 0x6d8   :  { %1538 = vmatpush1.bf16.msra.mxu0 %v3416_v48  ;;  %1579 = vmatpush1.bf16.msra.mxu1 %v3419_v44 }
 0x6d9   :  { %1539 = vmatprep.subr.bf16.mxu0 %v3422_v45  ;;  %1580 = vmatprep.subr.bf16.mxu1 %v3425_v19  ;;  %v3838_v45 = vld [vmem:[#allocation36_spill] sm:$0xff] }
 0x6da   :  { %1569 = vmatprep.mubr.bf16.mxu0 %v3824_v32  ;;  %1610 = vmatprep.mubr.bf16.mxu1 %v3824_v32 }
 0x6dc   :  { %1540 = vmatpush1.bf16.msra.mxu0 %v3430_v9  ;;  %1581 = vmatpush1.bf16.msra.mxu1 %v3433_v17  ;;  %v3839_v9 = vld [vmem:[#allocation37_spill] sm:$0xff] }
 0x6dd   :  { %1541 = vmatprep.subr.bf16.mxu0 %v3436_v30  ;;  %1582 = vmatprep.subr.bf16.mxu1 %v3439_v20 }
 0x6e0   :  { %1542 = vmatpush1.bf16.msra.mxu0 %v3442_v15  ;;  %1583 = vmatpush1.bf16.msra.mxu1 %v3445_v29  ;;  %v3840_v15 = vld [vmem:[#allocation38_spill] sm:$0xff] }
 0x6e1   :  { %1543 = vmatprep.subr.bf16.mxu0 %v3448_v14  ;;  %1584 = vmatprep.subr.bf16.mxu1 %v3451_v39  ;;  %v3841_v14 = vld [vmem:[#allocation39_spill] sm:$0xff] }
 0x6e4   :  { %1544 = vmatpush1.bf16.msra.mxu0 %v3454_v40  ;;  %1585 = vmatpush1.bf16.msra.mxu1 %v3457_v41 }
 0x6e5   :  { %1545 = vmatprep.subr.bf16.mxu0 %v3504_v18  ;;  %1586 = vmatprep.subr.bf16.mxu1 %v3507_v27 }
 0x6e8   :  { %1546 = vmatpush1.bf16.msra.mxu0 %v3510_v28  ;;  %1587 = vmatpush1.bf16.msra.mxu1 %v3513_v0 }
 0x6e9   :  { %1547 = vmatprep.subr.bf16.mxu0 %v3516_v16  ;;  %1588 = vmatprep.subr.bf16.mxu1 %v3519_v35 }
 0x6ec   :  { %1548 = vmatpush1.bf16.msra.mxu0 %v3522_v31  ;;  %1589 = vmatpush1.bf16.msra.mxu1 %v3525_v33 }
 0x6ed   :  { %1549 = vmatprep.subr.bf16.mxu0 %v3528_v37  ;;  %1590 = vmatprep.subr.bf16.mxu1 %v3531_v55 }
 0x6f0   :  { %1550 = vmatpush1.bf16.msra.mxu0 %v3534_v61  ;;  %1591 = vmatpush1.bf16.msra.mxu1 %v3537_v4 }
 0x6f1   :  { %1551 = vmatprep.subr.bf16.mxu0 %v3540_v58  ;;  %1592 = vmatprep.subr.bf16.mxu1 %v3543_v59 }
 0x6f4   :  { %1552 = vmatpush1.bf16.msra.mxu0 %v3546_v60  ;;  %1593 = vmatpush1.bf16.msra.mxu1 %v3549_v62 }
 0x6f5   :  { %1815 = vmatprep.subr.bf16.mxu1 %v2456_v10  ;;  %1694 = vmatprep.subr.bf16.mxu0 %v2474_v52  ;;  %v2505_v52 = vld [vmem:[%s3790_s8 + $0x70] ss:$8 sps:$4 sm:$0xff]  }
 0x7aa   :  { %v1456_v48 = vpop.f32.mrb[40].mxu0  ;;  %v1497_v44 = vpop.f32.mrb[40].mxu1 }
 0x7ab   :  { %v1504_v19 = vadd.f32 %v1456_v48, %v3838_v45  ;;  %v1506_v17 = vadd.f32 %v1497_v44, %v3839_v9  ;;  %v1458_v30 = vpop.f32.mrb[41].mxu0  ;;  %v1499_v20 = vpop.f32.mrb[41].mxu1  ;;  %v2495_v48 = vld [vmem:[%s3790_s8 + $0x34] ss:$8 sps:$4 sm:$0xff]   ;;  %v2493_v44 = vld [vmem:[%s3790_s8 + $0x30] ss:$8 sps:$4 sm:$0xff]  }
 0x7ac   :  { %v1505_v29 = vadd.f32 %v1458_v30, %v3840_v15  ;;  %v1507_v39 = vadd.f32 %v1499_v20, %v3841_v14  ;;  %v1460_v40 = vpop.f32.mrb[42].mxu0  ;;  %v1501_v41 = vpop.f32.mrb[42].mxu1  ;;  %v2498_v45 = vld [vmem:[%s3790_s8 + $0x44] ss:$8 sps:$4 sm:$0xff]   ;;  %v3843_v15 = vld [vmem:[#allocation41_spill] sm:$0xff] }
 0x7ad   :  { %v2285_v36 = vmul.f32 -1.442695, %v1504_v19  ;;  %v1461_v18 = vpop.f32.mrb[43].mxu0  ;;  %v1502_v27 = vpop.f32.mrb[43].mxu1  ;;  %v2496_v19 = vld [vmem:[%s3790_s8 + $0x40] ss:$8 sps:$4 sm:$0xff]  }
 0x7ae   :  { %v2286_v28 = vmul.f32 -1.442695, %v1505_v29  ;;  %v2287_v0 = vmul.f32 -1.442695, %v1507_v39  ;;  %v3842_v30 = vld [vmem:[#allocation40_spill] sm:$0xff]  ;;  %v3844_v40 = vld [vmem:[#allocation42_spill] sm:$0xff] }
 0x7af   :  { %2620 = vpow2.f32 %v2285_v36  ;;  %v3845_v36 = vld [vmem:[#allocation43_spill] sm:$0xff] }
 0x7b0   :  { %2622 = vpow2.f32 %v2286_v28 }
 0x7b1   :  { %2624 = vpow2.f32 %v2287_v0 }
 0x7b2   :  { %2626 = vtanh.f32 %v1506_v17 }
 0x7b9   :  { %v2621_v16 = vpop.eup %2620 }
 0x7ba   :  { %v2623_v35 = vpop.eup %2622  ;;  %v1511_v31 = vadd.f32 1.0, %v2621_v16 }
 0x7bb   :  { %v1517_v33 = vadd.f32 1.0, %v2623_v35  ;;  %v2625_v37 = vpop.eup %2624 }
 0x7bc   :  { %2628 = vrcp.f32 %v1511_v31  ;;  %v2627_v55 = vpop.eup %2626  ;;  %v1524_v59 = vadd.f32 1.0, %v2625_v37 }
 0x7bd   :  { %2630 = vrcp.f32 %v1517_v33 }
 0x7be   :  { %2632 = vrcp.f32 %v1524_v59 }
 0x7c6   :  { %v2629_v61 = vpop.eup %2628 }
 0x7c7   :  { %v2631_v4 = vpop.eup %2630  ;;  %v1528_v58 = vmul.f32 %v2629_v61, %v2627_v55 }
 0x7c8   :  { %v1527_v60 = vmul.f32 %v2631_v4, %v3559_v24  ;;  %v2633_v5 = vpop.eup %2632  ;;  %v2486_v24 = vld [vmem:[%s3790_s8 + $0x4] ss:$8 sps:$4 sm:$0xff]  }
 0x7ca   :  { %v3599_v62 = vadd.f32 %v1528_v58, %v1527_v60 }
 0x7cc   :  { %2634 = vtanh.f32 %v3599_v62 }
 0x7d6   :  { %v2635_v6 = vpop.eup %2634 }
 0x7d7   :  { %v1531_v7 = vmul.f32 %v2635_v6, %v2633_v5 }
 0x7d9   :  { %v1536_v8 = vpack.c.bf16 %v1531_v7, %v1531_v7 }
 0x7db   :  { %1570 = vmatmul.mubr.bf16.vlgmr.msra.gmra.mrb[44].mxu0 %v1536_v8  ;;  %1611 = vmatmul.mubr.bf16.vlgmr.msra.gmra.mrb[44].mxu1 %v1536_v8 }
 0x7dc   :  { %1726 = vmatprep.mubr.bf16.mxu0 %v3824_v32  ;;  %1847 = vmatprep.mubr.bf16.mxu1 %v3824_v32 }
 0x7dd   :  { %1816 = vmatpush1.bf16.msra.mxu1 %v2454_v11  ;;  %1695 = vmatpush1.bf16.msra.mxu0 %v2472_v57  ;;  %v2502_v57 = vld [vmem:[%s3790_s8 + $0x60] ss:$8 sps:$4 sm:$0xff]  }
 0x7de   :  { %1817 = vmatprep.subr.bf16.mxu1 %v2459_v12  ;;  %1696 = vmatprep.subr.bf16.mxu0 %v2480_v54  ;;  %v2508_v54 = vld [vmem:[%s3790_s8 + $0x80] ss:$8 sps:$4 sm:$0xff]  }
 0x7e1   :  { %1818 = vmatpush1.bf16.msra.mxu1 %v2457_v13  ;;  %1697 = vmatpush1.bf16.msra.mxu0 %v2478_v56  ;;  %v2513_v56 = vld [vmem:[%s3790_s8 + $0x94] ss:$8 sps:$4 sm:$0xff]  }
 0x7e2   :  { %1819 = vmatprep.subr.bf16.mxu1 %v2462_v42  ;;  %2009 = vmatprep.subr.bf16.mxu0 %v2486_v24  ;;  %v2519_v24 = vld [vmem:[%s3792_s10 + $0x28] sm:$0xff]  }
 0x7e4   :  { %2295 = vmatmul.mubr.msk.bf16.vlgmr.msra.gmra.mrb[48].mxu0 %vm1690_vm0, %v1648_v21  ;;  %v2516_v21 = vld [vmem:[%s3792_s10 + $0x10] sm:$0xff]  }
 0x7e5   :  { %1820 = vmatpush1.bf16.msra.mxu1 %v2460_v43  ;;  %2010 = vmatpush1.bf16.msra.mxu0 %v2484_v25  ;;  %v2518_v25 = vld [vmem:[%s3792_s10 + $0x20] sm:$0xff]  }
 0x7e6   :  { %1821 = vmatprep.subr.bf16.mxu1 %v2465_v46  ;;  %2011 = vmatprep.subr.bf16.mxu0 %v2489_v26  ;;  %v1856_v26 = vld [vmem:[%s3789_s7] sm:$0x3] }
 0x7e9   :  { %1822 = vmatpush1.bf16.msra.mxu1 %v2463_v47  ;;  %2012 = vmatpush1.bf16.msra.mxu0 %v2487_v63  ;;  %v3846_v63 = vld [vmem:[#allocation21_spill] sm:$0xff] }
 0x7ea   :  { %1823 = vmatprep.subr.bf16.mxu1 %v2468_v49  ;;  %2013 = vmatprep.subr.bf16.mxu0 %v2492_v1  ;;  %v2501_v49 = vld [vmem:[%s3790_s8 + $0x54] ss:$8 sps:$4 sm:$0xff]   ;;  %v1861_v1 = vrot.slane %v1856_v26, %v3846_v63 }
 0x7ed   :  { %1824 = vmatpush1.bf16.msra.mxu1 %v2466_v50  ;;  %2014 = vmatpush1.bf16.msra.mxu0 %v2490_v2 }
 0x7ee   :  { %1825 = vmatprep.subr.bf16.mxu1 %v2471_v38  ;;  %2015 = vmatprep.subr.bf16.mxu0 %v2495_v48  ;;  %v2504_v38 = vld [vmem:[%s3790_s8 + $0x64] ss:$8 sps:$4 sm:$0xff]  }
 0x7ef   :  { %v3847_v48 = vld [vmem:[#allocation22_spill] sm:$0xff] }
 0x7f1   :  { %1826 = vmatpush1.bf16.msra.mxu1 %v2469_v51  ;;  %2016 = vmatpush1.bf16.msra.mxu0 %v2493_v44  ;;  %v2507_v51 = vld [vmem:[%s3790_s8 + $0x74] ss:$8 sps:$4 sm:$0xff]   ;;  %v1865_v44 = vrot.slane %v1856_v26, %v3847_v48 }
 0x7f2   :  { %1827 = vmatprep.subr.bf16.mxu1 %v2477_v53  ;;  %2017 = vmatprep.subr.bf16.mxu0 %v2498_v45  ;;  %v2510_v53 = vld [vmem:[%s3790_s8 + $0x84] ss:$8 sps:$4 sm:$0xff]  }
 0x7f5   :  { %1828 = vmatpush1.bf16.msra.mxu1 %v2475_v3  ;;  %2018 = vmatpush1.bf16.msra.mxu0 %v2496_v19  ;;  %v2514_v3 = vld [vmem:[%s3792_s10] sm:$0xff]  }
 0x7f6   :  { %1829 = vmatprep.subr.bf16.mxu1 %v2483_v22  ;;  %2019 = vmatprep.subr.bf16.mxu0 %v2501_v49  ;;  %v2515_v22 = vld [vmem:[%s3792_s10 + $0x8] sm:$0xff]  }
 0x7f9   :  { %1830 = vmatpush1.bf16.msra.mxu1 %v2481_v23  ;;  %v2517_v23 = vld [vmem:[%s3792_s10 + $0x18] sm:$0xff]  }
 0x7fa   :  { %2144 = vmatprep.subr.bf16.mxu1 %v3824_v32 }
 0x8ae   :  { %v1571_v9 = vpop.f32.mrb[44].mxu0  ;;  %v1612_v17 = vpop.f32.mrb[44].mxu1 }
 0x8af   :  { %v1619_v20 = vadd.f32 %v1571_v9, %v3842_v30  ;;  %v1621_v29 = vadd.f32 %v1612_v17, %v3843_v15  ;;  %v1573_v14 = vpop.f32.mrb[45].mxu0  ;;  %v1614_v39 = vpop.f32.mrb[45].mxu1 }
 0x8b0   :  { %v1620_v41 = vadd.f32 %v1573_v14, %v3844_v40  ;;  %v1622_v18 = vadd.f32 %v1614_v39, %v3845_v36  ;;  %v1575_v27 = vpop.f32.mrb[46].mxu0  ;;  %v1616_v28 = vpop.f32.mrb[46].mxu1  ;;  %v2521_v36 = vld [vmem:[%s3792_s10 + $0x38] sm:$0xff]  }
 0x8b1   :  { %v2288_v0 = vmul.f32 -1.442695, %v1619_v20  ;;  %v1576_v16 = vpop.f32.mrb[47].mxu0  ;;  %v1617_v35 = vpop.f32.mrb[47].mxu1  ;;  %v2523_v27 = vld [vmem:[%s3792_s10 + $0x48] sm:$0xff]  }
 0x8b2   :  { %v2289_v31 = vmul.f32 -1.442695, %v1620_v41  ;;  %v2290_v33 = vmul.f32 -1.442695, %v1622_v18  ;;  %v2520_v41 = vld [vmem:[%s3792_s10 + $0x30] sm:$0xff]   ;;  %v2522_v18 = vld [vmem:[%s3792_s10 + $0x40] sm:$0xff]  }
 0x8b3   :  { %2636 = vpow2.f32 %v2288_v0  ;;  %v1894_v28 = vld [vmem:[#allocation14] sm:$0x3] }
 0x8b4   :  { %2638 = vpow2.f32 %v2289_v31  ;;  %v1899_v0 = vrot.slane %v1894_v28, %v3846_v63  ;;  %v1903_v16 = vrot.slane %v1894_v28, %v3847_v48 }
 0x8b5   :  { %2640 = vpow2.f32 %v2290_v33 }
 0x8b6   :  { %2642 = vtanh.f32 %v1621_v29 }
 0x8b7   :  { %v1728_v43 = vpop.f32.mrb[48].mxu0 }
 0x8b8   :  { %v1730_v46 = vpop.f32.mrb[49].mxu0 }
 0x8b9   :  { %v1732_v47 = vpop.f32.mrb[50].mxu0 }
 0x8ba   :  { %v1733_v50 = vpop.f32.mrb[51].mxu0 }
 0x8bd   :  { %v2637_v37 = vpop.eup %2636 }
 0x8be   :  { %v2639_v55 = vpop.eup %2638  ;;  %v1626_v61 = vadd.f32 1.0, %v2637_v37 }
 0x8bf   :  { %v1632_v4 = vadd.f32 1.0, %v2639_v55  ;;  %v2641_v58 = vpop.eup %2640 }
 0x8c0   :  { %2644 = vrcp.f32 %v1626_v61  ;;  %v2643_v59 = vpop.eup %2642  ;;  %v1639_v7 = vadd.f32 1.0, %v2641_v58 }
 0x8c1   :  { %2646 = vrcp.f32 %v1632_v4 }
 0x8c2   :  { %2648 = vrcp.f32 %v1639_v7 }
 0x8ca   :  { %v2645_v60 = vpop.eup %2644 }
 0x8cb   :  { %v2647_v5 = vpop.eup %2646  ;;  %v1643_v6 = vmul.f32 %v2645_v60, %v2643_v59  ;;  %v2333_v60 = vld [vmem:[%s3793_s11] ss:$0 sm:$0xff] }
 0x8cc   :  { %v1642_v8 = vmul.f32 %v2647_v5, %v3599_v62  ;;  %v2649_v11 = vpop.eup %2648  ;;  %v2499_v62 = vld [vmem:[%s3790_s8 + $0x50] ss:$8 sps:$4 sm:$0xff]  }
 0x8cd   :  { %2020 = vmatpush1.bf16.msra.mxu0 %v2499_v62 }
 0x8ce   :  { %v1644_v10 = vadd.f32 %v1643_v6, %v1642_v8  ;;  %2021 = vmatprep.subr.bf16.mxu0 %v2504_v38 }
 0x8d0   :  { %2650 = vtanh.f32 %v1644_v10 }
 0x8d1   :  { %2022 = vmatpush1.bf16.msra.mxu0 %v2502_v57 }
 0x8d2   :  { %2023 = vmatprep.subr.bf16.mxu0 %v2507_v51 }
 0x8d5   :  { %2024 = vmatpush1.bf16.msra.mxu0 %v2505_v52 }
 0x8d6   :  { %2025 = vmatprep.subr.bf16.mxu0 %v2510_v53 }
 0x8d9   :  { %2026 = vmatpush1.bf16.msra.mxu0 %v2508_v54 }
 0x8da   :  { %v2651_v12 = vpop.eup %2650  ;;  %2027 = vmatprep.subr.bf16.mxu0 %v2513_v56 }
 0x8db   :  { %v1646_v13 = vmul.f32 %v2651_v12, %v2649_v11 }
 0x8dd   :  { %v1649_v42 = vpack.c.bf16 %v1646_v13, %v1646_v13  ;;  %2028 = vmatpush1.bf16.msra.mxu0 %v2511_v34 }
 0x8df   :  { %1848 = vmatmul.mubr.bf16.vlgmr.msra.gmra.mrb[48].mxu1 %v1649_v42 }
 0x8e0   :  { %2145 = vmatpush1.bf16.msra.mxu1 %v2514_v3 }
 0x8e1   :  { %2146 = vmatprep.subr.bf16.mxu1 %v3824_v32 }
 0x8e4   :  { %2147 = vmatpush1.bf16.msra.mxu1 %v2515_v22 }
 0x8e5   :  { %2148 = vmatprep.subr.bf16.mxu1 %v3824_v32 }
 0x8e8   :  { %2149 = vmatpush1.bf16.msra.mxu1 %v2516_v21 }
 0x8e9   :  { %2150 = vmatprep.subr.bf16.mxu1 %v3824_v32 }
 0x8ec   :  { %2151 = vmatpush1.bf16.msra.mxu1 %v2517_v23 }
 0x8ed   :  { %2152 = vmatprep.subr.bf16.mxu1 %v3824_v32 }
 0x8f0   :  { %2153 = vmatpush1.bf16.msra.mxu1 %v2518_v25 }
 0x8f1   :  { %2154 = vmatprep.subr.bf16.mxu1 %v3824_v32 }
 0x8f4   :  { %2155 = vmatpush1.bf16.msra.mxu1 %v2519_v24 }
 0x8f5   :  { %2156 = vmatprep.subr.bf16.mxu1 %v3824_v32 }
 0x8f8   :  { %2157 = vmatpush1.bf16.msra.mxu1 %v2520_v41 }
 0x8f9   :  { %2158 = vmatprep.subr.bf16.mxu1 %v3824_v32 }
 0x8fc   :  { %2159 = vmatpush1.bf16.msra.mxu1 %v2521_v36 }
 0x8fd   :  { %2160 = vmatprep.subr.bf16.mxu1 %v3824_v32 }
 0x900   :  { %2161 = vmatpush1.bf16.msra.mxu1 %v2522_v18 }
 0x901   :  { %2162 = vmatprep.subr.bf16.mxu1 %v3824_v32 }
 0x904   :  { %2163 = vmatpush1.bf16.msra.mxu1 %v2523_v27 }
 0x9b2   :  { %v1849_v2 = vpop.f32.mrb[48].mxu1 }
 0x9b3   :  { %v1850_v45 = vadd.f32 %v1849_v2, %v1728_v43  ;;  %v1851_v19 = vpop.f32.mrb[49].mxu1 }
 0x9b4   :  { %v1852_v9 = vadd.f32 %v1851_v19, %v1730_v46  ;;  %v1853_v17 = vpop.f32.mrb[50].mxu1 }
 0x9b5   :  { %v1868_v30 = vadd.f32 %v1861_v1, %v1850_v45  ;;  %v1854_v20 = vpop.f32.mrb[51].mxu1 }
 0x9b6   :  { %v1869_v15 = vadd.f32 %v1865_v44, %v1852_v9 }
 0x9b7   :  { %2652 = vtanh.f32 %v1868_v30 }
 0x9b8   :  { %2654 = vtanh.f32 %v1869_v15 }
 0x9c1   :  { %v2653_v29 = vpop.eup %2652 }
 0x9c2   :  { %v2655_v14 = vpop.eup %2654  ;;  %v1872_v40 = vpack.c.bf16 %v2653_v29, %v2653_v29 }
 0x9c3   :  { %v1873_v39 = vpack.c.bf16 %v2655_v14, %v2655_v14 }
 0x9c5   :  { %2332 = vmatprep.mubr.msk.bf16.mxu0 %vm1690_vm0, %v1873_v39 }
 0x9c6   :  { %2042 = vmatmul.mubr.bf16.vlgmr.msra.gmra.mrb[52].mxu0 %v1872_v40 }
 0xa99   :  { %v2043_v35 = vpop.f32.mrb[52].mxu0 }
 0xa9a   :  { %v2044_v31 = vadd.f32 %v2043_v35, %v1899_v0  ;;  %v2045_v33 = vpop.f32.mrb[53].mxu0 }
 0xa9b   :  { %v2046_v37 = vadd.f32 %v2045_v33, %v1903_v16  ;;  %v2047_v55 = vpop.f32.mrb[54].mxu0 }
 0xa9c   :  { %2656 = vtanh.f32 %v2044_v31  ;;  %v2048_v61 = vpop.f32.mrb[55].mxu0 }
 0xa9d   :  { %2658 = vtanh.f32 %v2046_v37 }
 0xaa6   :  { %v2657_v4 = vpop.eup %2656 }
 0xaa7   :  { %v2659_v32 = vpop.eup %2658  ;;  %v2052_v59 = vpack.c.bf16 %v2657_v4, %v2657_v4 }
 0xaa8   :  { %v2053_v58 = vpack.c.bf16 %v2659_v32, %v2659_v32 }
 0xaaa   :  { %2344 = vmatprep.mubr.msk.bf16.mxu1 %vm1690_vm0, %v2053_v58 }
 0xaab   :  { %2177 = vmatmul.mubr.bf16.vlgmr.msra.gmra.mrb[52].mxu1 %v2052_v59 }
 0xb7e   :  { %v2178_v5 = vpop.f32.mrb[52].mxu1 }
 0xb7f   :  { %v2179_v6 = vadd.f32 %v2333_v60, %v2178_v5  ;;  %v2180_v7 = vpop.f32.mrb[53].mxu1 }
 0xb80   :  { %v2181_v8 = vpop.f32.mrb[54].mxu1 }
 0xb81   :  { %2184 = vst [vmem:[#allocation15] sm:$0xff] %v2179_v6  ;;  %v2182_v10 = vpop.f32.mrb[55].mxu1 }
 0xb82   :  { %2857 = shalt.err (!%p2854_p4)
}
 0xb83   :  { %s2858_s11 = scalar_lea.hbm %s3794_s12, 128 }
 0xb84   :  { %p2859_p5 = scmp.ne.s32.totalorder %s3794_s12, %s2858_s11  ;;  %p2862_p6 = scmp.lt.u32.totalorder %s2858_s11, %s3794_s12 }
 0xb86   :  { %p2864_p7 = pnand %p2862_p6, %p2859_p5 }
 0xb88   :  { %2867 = shalt.err (!%p2864_p7)
}
 0xb89   :  { %2194 = dma.vmem_to_hbm [thread:$0]  %s2192_s25, 128, %s3794_s12, [#allocation5]  }
 0xb8a   :  { %2876 = dma.done.wait [#allocation5], 128  }
 0xb8b   :  { %2877 = vsyncadd [#allocation5], 4294967168 }
 0xb8c   :  { %2198 = vsyncpa [#allocation4], 1 }
 0xb8d   :  { %2199 = vsyncpa [#allocation7], 1 }
 0xb8e   :  { %2200 = vsyncpa [#allocation10], 1 }
 0xb8f   :  { %2201 = vsyncpa [#allocation13], 1 }
 0xb90   :  { %2202 = vsyncpa [#allocation5], 1 }

</bundles_post_ra>
